<compile_context>
chip_gen: v7x
topology: tpu7x:2x2x1
jax: 0.10.0
libtpu: 0.0.40
codegen_flags: <defaults>
</compile_context>

<pallas_src>
import functools

import jax
import jax.numpy as jnp
from jax.experimental import pallas as pl
from jax.experimental.pallas import tpu as pltpu


def _dense_block_kernel(x_ref, *wb_out, kh, kw, H, W):
    """Fused dense block for one batch element.

    x_ref:   (1, Cin, H*W)        input channels (channel-major, lanes = H*W)
    wb_out:  w0, b0, w1, b1, ..., out_ref
      w_l:   (kh*kw, G, C_l)      tap-major conv weights for layer l
      b_l:   (G, 1)               bias for layer l
    out_ref: (1, C_final, H*W)    output; also serves as the growing
                                  activation workspace (written row-slab by
                                  row-slab, layer by layer).
    """
    out_ref = wb_out[-1]
    wb = wb_out[:-1]
    n_layers = len(wb) // 2
    HW = H * W
    cin = x_ref.shape[1]

    # Input channels become the first rows of the workspace/output.
    out_ref[0, 0:cin, :] = x_ref[0]

    # Hoisted lane-index mask per conv tap (same for every layer).
    lane = jax.lax.broadcasted_iota(jnp.int32, (1, HW), 1)
    col = lane % W
    tap_masks = {}
    for dh in range(kh):
        for dw in range(kw):
            if dh == 0 and dw == 0:
                continue
            valid = (col < (W - dw)) & (lane < (H - dh) * W)
            tap_masks[(dh, dw)] = valid.astype(jnp.float32)     # (1, HW)

    c_cur = cin
    for l in range(n_layers):
        w_ref = wb[2 * l]            # (kh*kw, G, c_cur)
        b_ref = wb[2 * l + 1]        # (G, 1)
        G = w_ref.shape[1]
        assert w_ref.shape[2] == c_cur

        act = out_ref[0, 0:c_cur, :]                    # all channels so far
        acc = jnp.zeros((G, HW), jnp.float32)
        for dh in range(kh):
            for dw in range(kw):
                tap = dh * kw + dw
                shift = dh * W + dw
                if shift == 0:
                    shifted = act
                else:
                    # shifted[c, p] = act[c, p + shift] inside the image,
                    # zero over the causal right/bottom padding.
                    rolled = pltpu.roll(act, shift=HW - shift, axis=1)
                    shifted = rolled * tap_masks[(dh, dw)]
                acc = acc + jax.lax.dot_general(
                    w_ref[tap], shifted,
                    dimension_numbers=(((1,), (0,)), ((), ())),
                    preferred_element_type=jnp.float32)          # (G, HW) on MXU
        y = jnp.maximum(acc + b_ref[...], 0.0)                    # bias bcast over lanes
        out_ref[0, c_cur:c_cur + G, :] = y.astype(out_ref.dtype)
        c_cur += G


def dense_block_forward(x_nchw, params, kernel_size):
    """DenseBlock forward. Input/output in NCHW (PyTorch convention)."""
    kh, kw = kernel_size
    N, Cin, H, W = x_nchw.shape
    HW = H * W
    G = params[0][0].shape[1]
    C_final = Cin + len(params) * G

    x = x_nchw.reshape(N, Cin, HW)          # channel-major; no transpose needed
    flat_params = []
    in_specs = [pl.BlockSpec((1, Cin, HW), lambda n: (n, 0, 0))]
    for w, b in params:
        flat_params.extend((w, b))
        in_specs.append(pl.BlockSpec(w.shape, lambda n: (0, 0, 0)))
        in_specs.append(pl.BlockSpec(b.shape, lambda n: (0, 0)))

    kernel = functools.partial(_dense_block_kernel, kh=kh, kw=kw, H=H, W=W)
    out = pl.pallas_call(
        kernel,
        out_shape=jax.ShapeDtypeStruct((N, C_final, HW), jnp.float32),
        grid=(N,),
        in_specs=in_specs,
        out_specs=pl.BlockSpec((1, C_final, HW), lambda n: (n, 0, 0)),
        compiler_params=pltpu.CompilerParams(
            dimension_semantics=("parallel",)),
    )(x, *flat_params)
    return out.reshape(N, C_final, H, W)


def init_dense_block_params(key, in_channels, growth_rate, kernel_size,
                            layers_per_dense_block):
    """Deterministic PyTorch-Conv2d-style (uniform) init for every layer."""
    kh, kw = kernel_size
    params = []
    c = in_channels
    for _ in range(layers_per_dense_block):
        key, wk, bk = jax.random.split(key, 3)
        fan_in = c * kh * kw
        bound = 1.0 / jnp.sqrt(fan_in)
        # PyTorch layout (G, Cin, kh, kw) -> tap-major (kh*kw, G, Cin)
        w_torch = jax.random.uniform(wk, (growth_rate, c, kh, kw),
                                     jnp.float32, -bound, bound)
        w = jnp.transpose(w_torch, (2, 3, 0, 1)).reshape(kh * kw, growth_rate, c)
        b = jax.random.uniform(bk, (growth_rate, 1), jnp.float32, -bound, bound)
        params.append((w, b))
        c += growth_rate
    return params


def _reference_forward(x_nchw, params, kernel_size):
    """Pure-JAX reference (lax.conv) for correctness checking."""
    kh, kw = kernel_size
    x = x_nchw
    for w, b in params:
        G, cin = w.shape[1], w.shape[2]
        # tap-major (kh*kw, G, Cin) -> (G, Cin, kh, kw)
        w_oihw = jnp.transpose(w.reshape(kh, kw, G, cin), (2, 3, 0, 1))
        xpad = jnp.pad(x, ((0, 0), (0, 0), (0, kh - 1), (0, kw - 1)))
        y = jax.lax.conv_general_dilated(
            xpad, w_oihw, window_strides=(1, 1), padding="VALID",
            dimension_numbers=("NCHW", "OIHW", "NCHW"))
        y = jnp.maximum(y + b[:, 0][None, :, None, None], 0.0)
        x = jnp.concatenate([x, y], axis=1)
    return x


if __name__ == "__main__":
    key = jax.random.PRNGKey(0)
    batch, in_channels, spatial = 2, 4, 16
    growth_rate, kernel_size, layers = 20, (2, 2), 3

    kx, kp = jax.random.split(key)
    x = jax.random.normal(kx, (batch, in_channels, spatial, spatial), jnp.float32)
    params = init_dense_block_params(kp, in_channels, growth_rate,
                                     kernel_size, layers)

    out = jax.block_until_ready(dense_block_forward(x, params, kernel_size))

    expected_channels = in_channels + layers * growth_rate
    assert out.shape == (batch, expected_channels, spatial, spatial), out.shape

    ref = jax.block_until_ready(_reference_forward(x, params, kernel_size))
    assert jnp.allclose(out, ref, atol=1e-4, rtol=1e-4), "mismatch vs reference"

    print("KERNEL_OK")
</pallas_src>

<mosaic_0001>
module attributes {stable_mosaic.version = 11 : i64} {
  func.func @_dense_block_kernel(%arg0: i32, %arg1: memref<1x4x256xf32, #tpu.memory_space<vmem>>, %arg2: memref<4x20x4xf32, #tpu.memory_space<vmem>>, %arg3: memref<20x1xf32, #tpu.memory_space<vmem>>, %arg4: memref<4x20x24xf32, #tpu.memory_space<vmem>>, %arg5: memref<20x1xf32, #tpu.memory_space<vmem>>, %arg6: memref<4x20x44xf32, #tpu.memory_space<vmem>>, %arg7: memref<20x1xf32, #tpu.memory_space<vmem>>, %arg8: memref<1x64x256xf32, #tpu.memory_space<vmem>>) attributes {dimension_semantics = [#tpu.dimension_semantics<parallel>], iteration_bounds = array<i64: 2>, scalar_prefetch = 0 : i64, scratch_operands = 0 : i64, tpu.core_type = #tpu.core_type<tc>, window_params = [{transform_indices = @transform_0, window_bounds = array<i64: 1, 4, 256>}, {pipeline_mode = #tpu.pipeline_mode<synchronous>, transform_indices = @transform_1, window_bounds = array<i64: 4, 20, 4>}, {pipeline_mode = #tpu.pipeline_mode<synchronous>, transform_indices = @transform_2, window_bounds = array<i64: 20, 1>}, {pipeline_mode = #tpu.pipeline_mode<synchronous>, transform_indices = @transform_3, window_bounds = array<i64: 4, 20, 24>}, {pipeline_mode = #tpu.pipeline_mode<synchronous>, transform_indices = @transform_4, window_bounds = array<i64: 20, 1>}, {pipeline_mode = #tpu.pipeline_mode<synchronous>, transform_indices = @transform_5, window_bounds = array<i64: 4, 20, 44>}, {pipeline_mode = #tpu.pipeline_mode<synchronous>, transform_indices = @transform_6, window_bounds = array<i64: 20, 1>}, {transform_indices = @transform_7, window_bounds = array<i64: 1, 64, 256>}]} {
    %c0 = arith.constant 0 : index
    %c0_0 = arith.constant 0 : index
    %c0_1 = arith.constant 0 : index
    %0 = vector.load %arg1[%c0, %c0_0, %c0_1] : memref<1x4x256xf32, #tpu.memory_space<vmem>>, vector<1x4x256xf32>
    %1 = vector.shape_cast %0 : vector<1x4x256xf32> to vector<4x256xf32>
    %c0_2 = arith.constant 0 : index
    %c0_3 = arith.constant 0 : index
    %c0_4 = arith.constant 0 : index
    %2 = vector.load %arg8[%c0_2, %c0_3, %c0_4] : memref<1x64x256xf32, #tpu.memory_space<vmem>>, vector<1x4x256xf32>
    %3 = vector.shape_cast %2 : vector<1x4x256xf32> to vector<4x256xf32>
    %4 = vector.shape_cast %1 : vector<4x256xf32> to vector<1x4x256xf32>
    tpu.vector_store %arg8[%c0_2, %c0_3, %c0_4], %4 {strides = array<i32>} : memref<1x64x256xf32, #tpu.memory_space<vmem>>, vector<1x4x256xf32>,
    %5 = tpu.iota {dimensions = array<i32: 1>} : vector<1x256xi32>
    %c16_i32 = arith.constant 16 : i32
    %c0_i32 = arith.constant 0 : i32
    %6 = arith.cmpi eq, %c16_i32, %c0_i32 : i32
    %c1_i32 = arith.constant 1 : i32
    %7 = arith.select %6, %c1_i32, %c16_i32 : i32
    %8 = vector.broadcast %7 : i32 to vector<1x256xi32>
    %9 = arith.remsi %5, %8 : vector<1x256xi32>
    %c0_i32_5 = arith.constant 0 : i32
    %10 = vector.broadcast %c0_i32_5 : i32 to vector<1x256xi32>
    %11 = arith.cmpi ne, %9, %10 : vector<1x256xi32>
    %c0_i32_6 = arith.constant 0 : i32
    %12 = vector.broadcast %c0_i32_6 : i32 to vector<1x256xi32>
    %13 = arith.cmpi slt, %9, %12 : vector<1x256xi32>
    %c0_i32_7 = arith.constant 0 : i32
    %14 = arith.cmpi slt, %7, %c0_i32_7 : i32
    %15 = vector.broadcast %14 : i1 to vector<1x256xi1>
    %16 = vector.broadcast %15 : vector<1x256xi1> to vector<1x256xi1>
    %17 = arith.xori %13, %16 : vector<1x256xi1>
    %18 = arith.andi %17, %11 : vector<1x256xi1>
    %19 = vector.broadcast %7 : i32 to vector<1x256xi32>
    %20 = arith.addi %9, %19 : vector<1x256xi32>
    %21 = arith.select %18, %20, %9 : vector<1x256xi1>, vector<1x256xi32>
    %c15_i32 = arith.constant 15 : i32
    %22 = vector.broadcast %c15_i32 : i32 to vector<1x256xi32>
    %23 = arith.cmpi slt, %21, %22 : vector<1x256xi32>
    %c256_i32 = arith.constant 256 : i32
    %24 = vector.broadcast %c256_i32 : i32 to vector<1x256xi32>
    %25 = arith.cmpi slt, %5, %24 : vector<1x256xi32>
    %26 = arith.andi %23, %25 : vector<1x256xi1>
    %27 = arith.extui %26 : vector<1x256xi1> to vector<1x256xi32>
    %28 = arith.sitofp %27 : vector<1x256xi32> to vector<1x256xf32>
    %c16_i32_8 = arith.constant 16 : i32
    %29 = vector.broadcast %c16_i32_8 : i32 to vector<1x256xi32>
    %30 = arith.cmpi slt, %21, %29 : vector<1x256xi32>
    %c240_i32 = arith.constant 240 : i32
    %31 = vector.broadcast %c240_i32 : i32 to vector<1x256xi32>
    %32 = arith.cmpi slt, %5, %31 : vector<1x256xi32>
    %33 = arith.andi %30, %32 : vector<1x256xi1>
    %34 = arith.extui %33 : vector<1x256xi1> to vector<1x256xi32>
    %35 = arith.sitofp %34 : vector<1x256xi32> to vector<1x256xf32>
    %c15_i32_9 = arith.constant 15 : i32
    %36 = vector.broadcast %c15_i32_9 : i32 to vector<1x256xi32>
    %37 = arith.cmpi slt, %21, %36 : vector<1x256xi32>
    %c240_i32_10 = arith.constant 240 : i32
    %38 = vector.broadcast %c240_i32_10 : i32 to vector<1x256xi32>
    %39 = arith.cmpi slt, %5, %38 : vector<1x256xi32>
    %40 = arith.andi %37, %39 : vector<1x256xi1>
    %41 = arith.extui %40 : vector<1x256xi1> to vector<1x256xi32>
    %42 = arith.sitofp %41 : vector<1x256xi32> to vector<1x256xf32>
    %c0_11 = arith.constant 0 : index
    %c0_12 = arith.constant 0 : index
    %c0_13 = arith.constant 0 : index
    %43 = vector.load %arg8[%c0_11, %c0_12, %c0_13] : memref<1x64x256xf32, #tpu.memory_space<vmem>>, vector<1x4x256xf32>
    %44 = vector.shape_cast %43 : vector<1x4x256xf32> to vector<4x256xf32>
    %cst = arith.constant 0.000000e+00 : f32
    %45 = vector.broadcast %cst : f32 to vector<20x256xf32>
    %c0_14 = arith.constant 0 : index
    %c0_15 = arith.constant 0 : index
    %c0_16 = arith.constant 0 : index
    %46 = vector.load %arg2[%c0_14, %c0_15, %c0_16] : memref<4x20x4xf32, #tpu.memory_space<vmem>>, vector<1x20x4xf32>
    %47 = vector.shape_cast %46 : vector<1x20x4xf32> to vector<20x4xf32>
    %cst_17 = arith.constant dense<0.000000e+00> : vector<20x256xf32>
    %48 = tpu.matmul %47, %44, %cst_17 {dimension_numbers = #tpu.dot_dimension_numbers<[1], [0], [0], [1], [0, 0, 1, 1], [], []>} : vector<20x4xf32>, vector<4x256xf32>, vector<20x256xf32> -> vector<20x256xf32>
    %49 = arith.addf %45, %48 : vector<20x256xf32>
    %c255_i32 = arith.constant 255 : i32
    %50 = tpu.dynamic_rotate %44 by %c255_i32 dim 1 : vector<4x256xf32>, i32 -> vector<4x256xf32>
    %51 = vector.broadcast %28 : vector<1x256xf32> to vector<4x256xf32>
    %52 = arith.mulf %50, %51 : vector<4x256xf32>
    %c1 = arith.constant 1 : index
    %c0_18 = arith.constant 0 : index
    %c0_19 = arith.constant 0 : index
    %53 = vector.load %arg2[%c1, %c0_18, %c0_19] : memref<4x20x4xf32, #tpu.memory_space<vmem>>, vector<1x20x4xf32>
    %54 = vector.shape_cast %53 : vector<1x20x4xf32> to vector<20x4xf32>
    %cst_20 = arith.constant dense<0.000000e+00> : vector<20x256xf32>
    %55 = tpu.matmul %54, %52, %cst_20 {dimension_numbers = #tpu.dot_dimension_numbers<[1], [0], [0], [1], [0, 0, 1, 1], [], []>} : vector<20x4xf32>, vector<4x256xf32>, vector<20x256xf32> -> vector<20x256xf32>
    %56 = arith.addf %49, %55 : vector<20x256xf32>
    %c240_i32_21 = arith.constant 240 : i32
    %57 = tpu.dynamic_rotate %44 by %c240_i32_21 dim 1 : vector<4x256xf32>, i32 -> vector<4x256xf32>
    %58 = vector.broadcast %35 : vector<1x256xf32> to vector<4x256xf32>
    %59 = arith.mulf %57, %58 : vector<4x256xf32>
    %c2 = arith.constant 2 : index
    %c0_22 = arith.constant 0 : index
    %c0_23 = arith.constant 0 : index
    %60 = vector.load %arg2[%c2, %c0_22, %c0_23] : memref<4x20x4xf32, #tpu.memory_space<vmem>>, vector<1x20x4xf32>
    %61 = vector.shape_cast %60 : vector<1x20x4xf32> to vector<20x4xf32>
    %cst_24 = arith.constant dense<0.000000e+00> : vector<20x256xf32>
    %62 = tpu.matmul %61, %59, %cst_24 {dimension_numbers = #tpu.dot_dimension_numbers<[1], [0], [0], [1], [0, 0, 1, 1], [], []>} : vector<20x4xf32>, vector<4x256xf32>, vector<20x256xf32> -> vector<20x256xf32>
    %63 = arith.addf %56, %62 : vector<20x256xf32>
    %c239_i32 = arith.constant 239 : i32
    %64 = tpu.dynamic_rotate %44 by %c239_i32 dim 1 : vector<4x256xf32>, i32 -> vector<4x256xf32>
    %65 = vector.broadcast %42 : vector<1x256xf32> to vector<4x256xf32>
    %66 = arith.mulf %64, %65 : vector<4x256xf32>
    %c3 = arith.constant 3 : index
    %c0_25 = arith.constant 0 : index
    %c0_26 = arith.constant 0 : index
    %67 = vector.load %arg2[%c3, %c0_25, %c0_26] : memref<4x20x4xf32, #tpu.memory_space<vmem>>, vector<1x20x4xf32>
    %68 = vector.shape_cast %67 : vector<1x20x4xf32> to vector<20x4xf32>
    %cst_27 = arith.constant dense<0.000000e+00> : vector<20x256xf32>
    %69 = tpu.matmul %68, %66, %cst_27 {dimension_numbers = #tpu.dot_dimension_numbers<[1], [0], [0], [1], [0, 0, 1, 1], [], []>} : vector<20x4xf32>, vector<4x256xf32>, vector<20x256xf32> -> vector<20x256xf32>
    %70 = arith.addf %63, %69 : vector<20x256xf32>
    %c0_28 = arith.constant 0 : index
    %c0_29 = arith.constant 0 : index
    %71 = vector.load %arg3[%c0_28, %c0_29] : memref<20x1xf32, #tpu.memory_space<vmem>>, vector<20x1xf32>
    %72 = vector.broadcast %71 : vector<20x1xf32> to vector<20x256xf32>
    %73 = arith.addf %70, %72 : vector<20x256xf32>
    %cst_30 = arith.constant 0.000000e+00 : f32
    %74 = vector.broadcast %cst_30 : f32 to vector<20x256xf32>
    %75 = arith.maximumf %73, %74 : vector<20x256xf32>
    %c0_31 = arith.constant 0 : index
    %c4 = arith.constant 4 : index
    %c0_32 = arith.constant 0 : index
    %76 = vector.load %arg8[%c0_31, %c4, %c0_32] : memref<1x64x256xf32, #tpu.memory_space<vmem>>, vector<1x20x256xf32>
    %77 = vector.shape_cast %76 : vector<1x20x256xf32> to vector<20x256xf32>
    %78 = vector.shape_cast %75 : vector<20x256xf32> to vector<1x20x256xf32>
    tpu.vector_store %arg8[%c0_31, %c4, %c0_32], %78 {strides = array<i32>} : memref<1x64x256xf32, #tpu.memory_space<vmem>>, vector<1x20x256xf32>,
    %c0_33 = arith.constant 0 : index
    %c0_34 = arith.constant 0 : index
    %c0_35 = arith.constant 0 : index
    %79 = vector.load %arg8[%c0_33, %c0_34, %c0_35] : memref<1x64x256xf32, #tpu.memory_space<vmem>>, vector<1x24x256xf32>
    %80 = vector.shape_cast %79 : vector<1x24x256xf32> to vector<24x256xf32>
    %cst_36 = arith.constant 0.000000e+00 : f32
    %81 = vector.broadcast %cst_36 : f32 to vector<20x256xf32>
    %c0_37 = arith.constant 0 : index
    %c0_38 = arith.constant 0 : index
    %c0_39 = arith.constant 0 : index
    %82 = vector.load %arg4[%c0_37, %c0_38, %c0_39] : memref<4x20x24xf32, #tpu.memory_space<vmem>>, vector<1x20x24xf32>
    %83 = vector.shape_cast %82 : vector<1x20x24xf32> to vector<20x24xf32>
    %cst_40 = arith.constant dense<0.000000e+00> : vector<20x256xf32>
    %84 = tpu.matmul %83, %80, %cst_40 {dimension_numbers = #tpu.dot_dimension_numbers<[1], [0], [0], [1], [0, 0, 1, 1], [], []>} : vector<20x24xf32>, vector<24x256xf32>, vector<20x256xf32> -> vector<20x256xf32>
    %85 = arith.addf %81, %84 : vector<20x256xf32>
    %c255_i32_41 = arith.constant 255 : i32
    %86 = tpu.dynamic_rotate %80 by %c255_i32_41 dim 1 : vector<24x256xf32>, i32 -> vector<24x256xf32>
    %87 = vector.broadcast %28 : vector<1x256xf32> to vector<24x256xf32>
    %88 = arith.mulf %86, %87 : vector<24x256xf32>
    %c1_42 = arith.constant 1 : index
    %c0_43 = arith.constant 0 : index
    %c0_44 = arith.constant 0 : index
    %89 = vector.load %arg4[%c1_42, %c0_43, %c0_44] : memref<4x20x24xf32, #tpu.memory_space<vmem>>, vector<1x20x24xf32>
    %90 = vector.shape_cast %89 : vector<1x20x24xf32> to vector<20x24xf32>
    %cst_45 = arith.constant dense<0.000000e+00> : vector<20x256xf32>
    %91 = tpu.matmul %90, %88, %cst_45 {dimension_numbers = #tpu.dot_dimension_numbers<[1], [0], [0], [1], [0, 0, 1, 1], [], []>} : vector<20x24xf32>, vector<24x256xf32>, vector<20x256xf32> -> vector<20x256xf32>
    %92 = arith.addf %85, %91 : vector<20x256xf32>
    %c240_i32_46 = arith.constant 240 : i32
    %93 = tpu.dynamic_rotate %80 by %c240_i32_46 dim 1 : vector<24x256xf32>, i32 -> vector<24x256xf32>
    %94 = vector.broadcast %35 : vector<1x256xf32> to vector<24x256xf32>
    %95 = arith.mulf %93, %94 : vector<24x256xf32>
    %c2_47 = arith.constant 2 : index
    %c0_48 = arith.constant 0 : index
    %c0_49 = arith.constant 0 : index
    %96 = vector.load %arg4[%c2_47, %c0_48, %c0_49] : memref<4x20x24xf32, #tpu.memory_space<vmem>>, vector<1x20x24xf32>
    %97 = vector.shape_cast %96 : vector<1x20x24xf32> to vector<20x24xf32>
    %cst_50 = arith.constant dense<0.000000e+00> : vector<20x256xf32>
    %98 = tpu.matmul %97, %95, %cst_50 {dimension_numbers = #tpu.dot_dimension_numbers<[1], [0], [0], [1], [0, 0, 1, 1], [], []>} : vector<20x24xf32>, vector<24x256xf32>, vector<20x256xf32> -> vector<20x256xf32>
    %99 = arith.addf %92, %98 : vector<20x256xf32>
    %c239_i32_51 = arith.constant 239 : i32
    %100 = tpu.dynamic_rotate %80 by %c239_i32_51 dim 1 : vector<24x256xf32>, i32 -> vector<24x256xf32>
    %101 = vector.broadcast %42 : vector<1x256xf32> to vector<24x256xf32>
    %102 = arith.mulf %100, %101 : vector<24x256xf32>
    %c3_52 = arith.constant 3 : index
    %c0_53 = arith.constant 0 : index
    %c0_54 = arith.constant 0 : index
    %103 = vector.load %arg4[%c3_52, %c0_53, %c0_54] : memref<4x20x24xf32, #tpu.memory_space<vmem>>, vector<1x20x24xf32>
    %104 = vector.shape_cast %103 : vector<1x20x24xf32> to vector<20x24xf32>
    %cst_55 = arith.constant dense<0.000000e+00> : vector<20x256xf32>
    %105 = tpu.matmul %104, %102, %cst_55 {dimension_numbers = #tpu.dot_dimension_numbers<[1], [0], [0], [1], [0, 0, 1, 1], [], []>} : vector<20x24xf32>, vector<24x256xf32>, vector<20x256xf32> -> vector<20x256xf32>
    %106 = arith.addf %99, %105 : vector<20x256xf32>
    %c0_56 = arith.constant 0 : index
    %c0_57 = arith.constant 0 : index
    %107 = vector.load %arg5[%c0_56, %c0_57] : memref<20x1xf32, #tpu.memory_space<vmem>>, vector<20x1xf32>
    %108 = vector.broadcast %107 : vector<20x1xf32> to vector<20x256xf32>
    %109 = arith.addf %106, %108 : vector<20x256xf32>
    %cst_58 = arith.constant 0.000000e+00 : f32
    %110 = vector.broadcast %cst_58 : f32 to vector<20x256xf32>
    %111 = arith.maximumf %109, %110 : vector<20x256xf32>
    %c0_59 = arith.constant 0 : index
    %c24 = arith.constant 24 : index
    %c0_60 = arith.constant 0 : index
    %112 = vector.load %arg8[%c0_59, %c24, %c0_60] : memref<1x64x256xf32, #tpu.memory_space<vmem>>, vector<1x20x256xf32>
    %113 = vector.shape_cast %112 : vector<1x20x256xf32> to vector<20x256xf32>
    %114 = vector.shape_cast %111 : vector<20x256xf32> to vector<1x20x256xf32>
    tpu.vector_store %arg8[%c0_59, %c24, %c0_60], %114 {strides = array<i32>} : memref<1x64x256xf32, #tpu.memory_space<vmem>>, vector<1x20x256xf32>,
    %c0_61 = arith.constant 0 : index
    %c0_62 = arith.constant 0 : index
    %c0_63 = arith.constant 0 : index
    %115 = vector.load %arg8[%c0_61, %c0_62, %c0_63] : memref<1x64x256xf32, #tpu.memory_space<vmem>>, vector<1x44x256xf32>
    %116 = vector.shape_cast %115 : vector<1x44x256xf32> to vector<44x256xf32>
    %cst_64 = arith.constant 0.000000e+00 : f32
    %117 = vector.broadcast %cst_64 : f32 to vector<20x256xf32>
    %c0_65 = arith.constant 0 : index
    %c0_66 = arith.constant 0 : index
    %c0_67 = arith.constant 0 : index
    %118 = vector.load %arg6[%c0_65, %c0_66, %c0_67] : memref<4x20x44xf32, #tpu.memory_space<vmem>>, vector<1x20x44xf32>
    %119 = vector.shape_cast %118 : vector<1x20x44xf32> to vector<20x44xf32>
    %cst_68 = arith.constant dense<0.000000e+00> : vector<20x256xf32>
    %120 = tpu.matmul %119, %116, %cst_68 {dimension_numbers = #tpu.dot_dimension_numbers<[1], [0], [0], [1], [0, 0, 1, 1], [], []>} : vector<20x44xf32>, vector<44x256xf32>, vector<20x256xf32> -> vector<20x256xf32>
    %121 = arith.addf %117, %120 : vector<20x256xf32>
    %c255_i32_69 = arith.constant 255 : i32
    %122 = tpu.dynamic_rotate %116 by %c255_i32_69 dim 1 : vector<44x256xf32>, i32 -> vector<44x256xf32>
    %123 = vector.broadcast %28 : vector<1x256xf32> to vector<44x256xf32>
    %124 = arith.mulf %122, %123 : vector<44x256xf32>
    %c1_70 = arith.constant 1 : index
    %c0_71 = arith.constant 0 : index
    %c0_72 = arith.constant 0 : index
    %125 = vector.load %arg6[%c1_70, %c0_71, %c0_72] : memref<4x20x44xf32, #tpu.memory_space<vmem>>, vector<1x20x44xf32>
    %126 = vector.shape_cast %125 : vector<1x20x44xf32> to vector<20x44xf32>
    %cst_73 = arith.constant dense<0.000000e+00> : vector<20x256xf32>
    %127 = tpu.matmul %126, %124, %cst_73 {dimension_numbers = #tpu.dot_dimension_numbers<[1], [0], [0], [1], [0, 0, 1, 1], [], []>} : vector<20x44xf32>, vector<44x256xf32>, vector<20x256xf32> -> vector<20x256xf32>
    %128 = arith.addf %121, %127 : vector<20x256xf32>
    %c240_i32_74 = arith.constant 240 : i32
    %129 = tpu.dynamic_rotate %116 by %c240_i32_74 dim 1 : vector<44x256xf32>, i32 -> vector<44x256xf32>
    %130 = vector.broadcast %35 : vector<1x256xf32> to vector<44x256xf32>
    %131 = arith.mulf %129, %130 : vector<44x256xf32>
    %c2_75 = arith.constant 2 : index
    %c0_76 = arith.constant 0 : index
    %c0_77 = arith.constant 0 : index
    %132 = vector.load %arg6[%c2_75, %c0_76, %c0_77] : memref<4x20x44xf32, #tpu.memory_space<vmem>>, vector<1x20x44xf32>
    %133 = vector.shape_cast %132 : vector<1x20x44xf32> to vector<20x44xf32>
    %cst_78 = arith.constant dense<0.000000e+00> : vector<20x256xf32>
    %134 = tpu.matmul %133, %131, %cst_78 {dimension_numbers = #tpu.dot_dimension_numbers<[1], [0], [0], [1], [0, 0, 1, 1], [], []>} : vector<20x44xf32>, vector<44x256xf32>, vector<20x256xf32> -> vector<20x256xf32>
    %135 = arith.addf %128, %134 : vector<20x256xf32>
    %c239_i32_79 = arith.constant 239 : i32
    %136 = tpu.dynamic_rotate %116 by %c239_i32_79 dim 1 : vector<44x256xf32>, i32 -> vector<44x256xf32>
    %137 = vector.broadcast %42 : vector<1x256xf32> to vector<44x256xf32>
    %138 = arith.mulf %136, %137 : vector<44x256xf32>
    %c3_80 = arith.constant 3 : index
    %c0_81 = arith.constant 0 : index
    %c0_82 = arith.constant 0 : index
    %139 = vector.load %arg6[%c3_80, %c0_81, %c0_82] : memref<4x20x44xf32, #tpu.memory_space<vmem>>, vector<1x20x44xf32>
    %140 = vector.shape_cast %139 : vector<1x20x44xf32> to vector<20x44xf32>
    %cst_83 = arith.constant dense<0.000000e+00> : vector<20x256xf32>
    %141 = tpu.matmul %140, %138, %cst_83 {dimension_numbers = #tpu.dot_dimension_numbers<[1], [0], [0], [1], [0, 0, 1, 1], [], []>} : vector<20x44xf32>, vector<44x256xf32>, vector<20x256xf32> -> vector<20x256xf32>
    %142 = arith.addf %135, %141 : vector<20x256xf32>
    %c0_84 = arith.constant 0 : index
    %c0_85 = arith.constant 0 : index
    %143 = vector.load %arg7[%c0_84, %c0_85] : memref<20x1xf32, #tpu.memory_space<vmem>>, vector<20x1xf32>
    %144 = vector.broadcast %143 : vector<20x1xf32> to vector<20x256xf32>
    %145 = arith.addf %142, %144 : vector<20x256xf32>
    %cst_86 = arith.constant 0.000000e+00 : f32
    %146 = vector.broadcast %cst_86 : f32 to vector<20x256xf32>
    %147 = arith.maximumf %145, %146 : vector<20x256xf32>
    %c0_87 = arith.constant 0 : index
    %c44 = arith.constant 44 : index
    %c0_88 = arith.constant 0 : index
    %148 = vector.load %arg8[%c0_87, %c44, %c0_88] : memref<1x64x256xf32, #tpu.memory_space<vmem>>, vector<1x20x256xf32>
    %149 = vector.shape_cast %148 : vector<1x20x256xf32> to vector<20x256xf32>
    %150 = vector.shape_cast %147 : vector<20x256xf32> to vector<1x20x256xf32>
    tpu.vector_store %arg8[%c0_87, %c44, %c0_88], %150 {strides = array<i32>} : memref<1x64x256xf32, #tpu.memory_space<vmem>>, vector<1x20x256xf32>,
    return
  }
  func.func @transform_0(%arg0: i32) -> (i32, i32, i32) {
    %c0_i32 = arith.constant 0 : i32
    %c0_i32_0 = arith.constant 0 : i32
    %c0_i32_1 = arith.constant 0 : i32
    return %arg0, %c0_i32, %c0_i32_0 : i32, i32, i32
  }
  func.func @transform_1(%arg0: i32) -> (i32, i32, i32) {
    %c0_i32 = arith.constant 0 : i32
    %c0_i32_0 = arith.constant 0 : i32
    %c0_i32_1 = arith.constant 0 : i32
    %c0_i32_2 = arith.constant 0 : i32
    return %c0_i32, %c0_i32_0, %c0_i32_1 : i32, i32, i32
  }
  func.func @transform_2(%arg0: i32) -> (i32, i32) {
    %c0_i32 = arith.constant 0 : i32
    %c0_i32_0 = arith.constant 0 : i32
    %c0_i32_1 = arith.constant 0 : i32
    return %c0_i32, %c0_i32_0 : i32, i32
  }
  func.func @transform_3(%arg0: i32) -> (i32, i32, i32) {
    %c0_i32 = arith.constant 0 : i32
    %c0_i32_0 = arith.constant 0 : i32
    %c0_i32_1 = arith.constant 0 : i32
    %c0_i32_2 = arith.constant 0 : i32
    return %c0_i32, %c0_i32_0, %c0_i32_1 : i32, i32, i32
  }
  func.func @transform_4(%arg0: i32) -> (i32, i32) {
    %c0_i32 = arith.constant 0 : i32
    %c0_i32_0 = arith.constant 0 : i32
    %c0_i32_1 = arith.constant 0 : i32
    return %c0_i32, %c0_i32_0 : i32, i32
  }
  func.func @transform_5(%arg0: i32) -> (i32, i32, i32) {
    %c0_i32 = arith.constant 0 : i32
    %c0_i32_0 = arith.constant 0 : i32
    %c0_i32_1 = arith.constant 0 : i32
    %c0_i32_2 = arith.constant 0 : i32
    return %c0_i32, %c0_i32_0, %c0_i32_1 : i32, i32, i32
  }
  func.func @transform_6(%arg0: i32) -> (i32, i32) {
    %c0_i32 = arith.constant 0 : i32
    %c0_i32_0 = arith.constant 0 : i32
    %c0_i32_1 = arith.constant 0 : i32
    return %c0_i32, %c0_i32_0 : i32, i32
  }
  func.func @transform_7(%arg0: i32) -> (i32, i32, i32) {
    %c0_i32 = arith.constant 0 : i32
    %c0_i32_0 = arith.constant 0 : i32
    %c0_i32_1 = arith.constant 0 : i32
    return %arg0, %c0_i32, %c0_i32_0 : i32, i32, i32
  }
}

</mosaic_0001>

<bundles_post_ra>
// kernel: tpu_custom_call.1
= control target key start
LH: loop header
LB: loop body
LE: loop exit
PB: predicated region body
PF: predicated region fallthrough
CT: control target
= control target key end

     0   :  { %12 = vsyncpa [#allocation3], 0  ;;  %s3250_s0 = inlined_call_operand.vmem [shape: f32[2,4,256], index: 0, kind: input, shape index: {}]   ;;  %s3251_s1 = inlined_call_operand.vmem [shape: f32[4,20,4], index: 1, kind: input, shape index: {}]   ;;  %s3252_s2 = inlined_call_operand.vmem [shape: f32[20,1], index: 2, kind: input, shape index: {}]   ;;  %s3253_s3 = inlined_call_operand.vmem [shape: f32[4,20,24], index: 3, kind: input, shape index: {}]   ;;  %s3254_s4 = inlined_call_operand.vmem [shape: f32[20,1], index: 4, kind: input, shape index: {}]   ;;  %s3255_s5 = inlined_call_operand.vmem [shape: f32[4,20,44], index: 5, kind: input, shape index: {}]   ;;  %s3256_s6 = inlined_call_operand.vmem [shape: f32[20,1], index: 6, kind: input, shape index: {}]   ;;  %s3257_s7 = inlined_call_operand.hbm [shape: f32[2,64,256], index: 7, kind: output, shape index: {}]  }
   0x1   :  { %14 = vsyncpa [#allocation3 + $0x1], 0  ;;  %s2451_s24 = smov 0   ;;  %s2453_s25 = smov 0  }
   0x2   :  { %s2455_s26 = smov 0   ;;  %s2457_s27 = smov 0  }
   0x3 LB: > { %s2472_s28 = sadd.s32 4294967295, %s2400_s27   ;;  %s2064_s29 = sadd.s32 4294967294, %s2400_s27   ;;  %s2400_s27 = sphi %s2457_s27, %s3265_s27   ;;  %s2396_s26 = sphi %s2455_s26, %s3264_s26   ;;  %s2392_s25 = sphi %s2453_s25, %s3263_s25   ;;  %s2388_s24 = sphi %s2451_s24, %s3262_s24  }
   0x4   : > { %s2476_s30 = sadd.s32 1, %s2400_s27   ;;  %s179_s8 = sadd.s32 1, %s2396_s26 }
   0x5   : > { %s176_s9 = ssub.s32 %s2400_s27, %s2476_s30  ;;  %p189_p0 = scmp.ne.s32.totalorder %s2396_s26, %s2392_s25 }
   0x6   : > { %p177_p1 = scmp.eq.s32.totalorder %s176_s9, 0  ;;  %p190_p2 = scmp.eq.s32.totalorder %s2472_s28, 1 }
   0x7   : > { %p195_p3 = scmp.ne.s32.totalorder %s2392_s25, %s2388_s24  ;;  %p196_p4 = scmp.eq.s32.totalorder %s2064_s29, 1 }
   0x8   : > { %s2487_s10 = scalar_select %p177_p1, %s2396_s26, %s179_s8  }
   0x9   : > { %p2489_p5 = por %p190_p2, %p189_p0  ;;  %p2493_p6 = por %p196_p4, %p195_p3 }
   0xa   : > { %p2067_p7 = scmp.ge.s32.totalorder %s2400_s27, 1  ;;  %p240_p8 = scmp.lt.s32.totalorder %s2400_s27, 3 }
   0xc   : > { %p241_p9 = pnand %p2067_p7, %p240_p8 }
   0xd   : > { %s269_s13 = sand.u32 (!%p241_p9), 1, %s2392_s25   ;;  %p272_p10 = scmp.lt.s32.totalorder (!%p241_p9), %s2472_s28, 1  ;;  %v2402_v1 = vmov (!%p241_p9), 0.0   ;;  %v787_v5 = vld [vmem:[%s3252_s2 + $0x8] sm:$0xff] (!%p241_p9)  ;;  %v786_v6 = vld [vmem:[%s3252_s2] sm:$0xff] (!%p241_p9)  ;;  %v2406_v7 = vmov (!%p241_p9), 0   ;;  %v283_v9 = vlaneseq (!%p241_p9) }
   0xe   : > { %244 = sbr.rel (%p241_p9) target bundleno = 1203 (0x4b3), region = 48  ;;  %s2068_s14 = sshll.u32 (!%p241_p9), %s269_s13, 7  ;;  %435 = vmatprep.mubr.f32.mxu1 (!%p241_p9), %v2402_v1  ;;  %644 = vmatprep.mubr.f32.mxu0 (!%p241_p9), %v2402_v1  ;;  %v788_v8 = vld [vmem:[%s3252_s2 + $0x10] sm:$0xf] (!%p241_p9)  ;;  %vm364_vm6 = vcmask (!%p241_p9), 1043456   ;;  %v2076_v27 = vld [vmem:[%s3251_s1 + $0x18] sm:$0xff] (!%p241_p9) }
   0xf   : > { %s2509_s20 = scalar_lea.vmem (!%p241_p9), [#allocation2], %s2068_s14  ;;  %s2403_s21 = smov (!%p241_p9), 112   ;;  %2336 = vset.pattern.permute.xlu1 (!%p241_p9), %v2406_v7  ;;  %2335 = vset.pattern.permute.xlu0 (!%p241_p9), %v2406_v7  ;;  %v2540_v10 = vand.u32 (!%p241_p9), 127, %v283_v9  ;;  %vm354_vm8 = vcmask (!%p241_p9), 31744   ;;  %v2089_v28 = vld [vmem:[%s3251_s1 + $0x30] sm:$0xff] (!%p241_p9)  ;;  %v2077_v37 = vld [vmem:[%s3251_s1 + $0x20] sm:$0xff] (!%p241_p9) }
  0x10   : > { %s2404_s22 = smov (!%p241_p9), 127   ;;  %s2405_s23 = smov (!%p241_p9), 111   ;;  %v2090_v38 = vld [vmem:[%s3251_s1 + $0x38] sm:$0xff] (!%p241_p9)  ;;  %v2078_v39 = vld [vmem:[%s3251_s1 + $0x28] sm:$0xf] (!%p241_p9)  ;;  %v338_v41 = vld [vmem:[%s3251_s1] sm:$0xff] (!%p241_p9) }
  0x11   : > { %v285_v11 = vadd.s32 (!%p241_p9), 128, %v2540_v10  ;;  %v290_v12 = vand.u32 (!%p241_p9), 15, %v2540_v10  ;;  %vm556_vm3 = vcmp.lt.s32.totalorder (!%p241_p9), %v2540_v10, 112  ;;  %vm345_vm4 = vcmp.lt.s32.totalorder (!%p241_p9), %v2540_v10, 127  ;;  %v2091_v40 = vld [vmem:[%s3251_s1 + $0x40] sm:$0xf] (!%p241_p9) }
  0x12   : > { %vm673_vm7 = vcmp.lt.s32.totalorder (!%p241_p9), %v2540_v10, 111  ;;  %v2097_v42 = vld [vmem:[%s3251_s1 + $0x48] sm:$0xff] (!%p241_p9)  ;;  %v2098_v44 = vld [vmem:[%s3251_s1 + $0x50] sm:$0xff] (!%p241_p9)  ;;  %v2099_v46 = vld [vmem:[%s3251_s1 + $0x58] sm:$0xf] (!%p241_p9)  ;;  %vm881_vm9 = vcmask (!%p241_p9), 195584  }
  0x13   : > { %v297_v13 = vand.u32 (!%p241_p9), 15, %v285_v11  ;;  %vm310_vm0 = vcmp.lt.s32.totalorder (!%p241_p9), %v290_v12, 15  ;;  %vm323_vm2 = vcmp.lt.s32.totalorder (!%p241_p9), %v285_v11, 240  ;;  %v339_v43 = vld [vmem:[%s3251_s1 + $0x8] sm:$0xff] (!%p241_p9)  ;;  %v340_v45 = vld [vmem:[%s3251_s1 + $0x10] sm:$0xf] (!%p241_p9) }
  0x14   : > { %v2547_v16 = vsel (!%p241_p9), %vm310_vm0, 1.0, %v2402_v1  ;;  %v2553_v18 = vsel (!%p241_p9), %vm323_vm2, 1.0, %v2402_v1  ;;  %vm2407_vm10 = vmmov (!%p241_p9), 1   ;;  %vm1421_vm12 = vcmask (!%p241_p9), 359424   ;;  %s2002_s8 = sshll.u32 (!%p241_p9), %s2509_s20, 4  ;;  %s3201_s8 = int_to_ptr.vmem [resolvable:$true] %s2002_s8 }
  0x15   : > { %s273_s15 = scalar_select %p272_p10, %s2472_s28, 1  ;;  %vm311_vm1 = vcmp.lt.s32.totalorder %v297_v13, 15  ;;  %vm3005_vm11 = vmpackc.low %vm364_vm6, %vm2407_vm10 }
  0x16   : > { %v2550_v17 = vsel %vm311_vm1, 1.0, %v2402_v1  ;;  %vm331_vm5 = vmand %vm311_vm1, %vm323_vm2 }
  0x17   : > { %s2160_s16 = sshll.u32 %s273_s15, 3  ;;  %v2572_v29 = vsel %vm331_vm5, 1.0, %v2402_v1 }
  0x18   : > { %s276_s19 = scalar_lea.vmem %s3250_s0, %s2160_s16  ;;  %s2338_s16 = scalar_lea.vmem %s3201_s8, 2048 }
  0x19   : > { %v277_v0 = vld [vmem:[%s276_s19] sm:$0xff]  ;;  %p2339_p11 = scmp.ne.s32.totalorder %s3201_s8, %s2338_s16 }
  0x1a   : > { %281 = vst [vmem:[%s2509_s20] sm:$0xf] %v277_v0  ;;  %v279_v2 = vcombine.high %v277_v0, %v277_v0 }
  0x1b   : > { %p2340_p12 = pnand %p2339_p11, %p2489_p5 }
  0x1c   : > { %282 = vst [vmem:[%s2509_s20 + $0x8] sm:$0xf] %v279_v2 }
  0x1d   : > { %p2341_p13 = pneg %p2340_p12 }
  0x21   : > { %v2514_v3 = vld [vmem:[%s2509_s20] sm:$0xf] }
  0x22   : > { %552 = vrot.lane.b32.xlu1 %v2514_v3, %s2403_s21  ;;  %341 = vrot.lane.b32.xlu0 %v2514_v3, %s2404_s22 }
  0x23   : > { %v2521_v4 = vld [vmem:[%s2509_s20 + $0x8] sm:$0xf] }
  0x26   : > { %554 = vrot.lane.b32.xlu1 %v2521_v4, %s2403_s21  ;;  %343 = vrot.lane.b32.xlu0 %v2521_v4, %s2404_s22 }
  0x2a   : > { %671 = vrot.lane.b32.xlu1 %v2521_v4, %s2405_s23  ;;  %669 = vrot.lane.b32.xlu0 %v2514_v3, %s2405_s23 }
  0x2e   : > { %796 = vperm.xlu1 %2336, %v787_v5   ;;  %791 = vperm.xlu0 %2335, %v786_v6  }
  0x32   : > { %801 = vperm.xlu1 %2336, %v788_v8  }
  0x94   : > { %v553_v14 = vpop.permute.xlu1 %552  ;;  %v342_v15 = vpop.permute.xlu0 %341 }
  0x98   : > { %v555_v19 = vpop.permute.xlu1 %554  ;;  %v344_v20 = vpop.permute.xlu0 %343 }
  0x99   : > { %v558_v21 = vsel %vm556_vm3, %v555_v19, %v553_v14  ;;  %v346_v22 = vsel %vm345_vm4, %v342_v15, %v344_v20  ;;  %v347_v23 = vsel %vm345_vm4, %v344_v20, %v342_v15  ;;  %v557_v30 = vsel %vm556_vm3, %v553_v14, %v555_v19 }
  0x9a   : > { %v348_v24 = vmul.f32 %v2547_v16, %v346_v22  ;;  %v349_v25 = vmul.f32 %v2550_v17, %v347_v23  ;;  %v560_v26 = vmul.f32 %v2553_v18, %v558_v21 }
  0x9c   : > { %2079 = vmatprep.subr.msk.mxu1 %vm364_vm6, %v349_v25  ;;  %2092 = vmatprep.subr.msk.mxu0 %vm364_vm6, %v560_v26  ;;  %v672_v31 = vpop.permute.xlu1 %671  ;;  %v670_v32 = vpop.permute.xlu0 %669 }
  0x9d   : > { %2080 = vmatpush1.msk.msra.mxu1 %vm364_vm6, %v348_v24  ;;  %2093 = vmatpush1.msk.msra.mxu0 %vm364_vm6, %v557_v30  ;;  %v674_v33 = vsel %vm673_vm7, %v670_v32, %v672_v31  ;;  %v675_v34 = vsel %vm673_vm7, %v672_v31, %v670_v32 }
  0x9e   : > { %2081 = vmatmul.mubr.msk.f32.vlgmr.msra.gmra.mrb[0].mxu1 %vm354_vm8, %v2076_v27  ;;  %2094 = vmatmul.mubr.msk.f32.vlgmr.msra.gmra.mrb[0].mxu0 %vm354_vm8, %v2089_v28  ;;  %v676_v35 = vmul.f32 %v2547_v16, %v674_v33  ;;  %v677_v36 = vmul.f32 %v2572_v29, %v675_v34  ;;  %v1319_v34 = vld [vmem:[%s3254_s4 + $0x8] sm:$0xff] }
  0x9f   : > { %441 = vmatprep.mubr.f32.mxu1 %v2402_v1  ;;  %650 = vmatprep.mubr.f32.mxu0 %v2402_v1 }
  0xa0   : > { %2100 = vmatprep.subr.msk.mxu0 %vm364_vm6, %v677_v36  ;;  %2084 = vmatprep.subr.msk.mxu1 %vm364_vm6, %v2521_v4  ;;  %v1320_v36 = vld [vmem:[%s3254_s4 + $0x10] sm:$0xf] }
  0xa1   : > { %2101 = vmatpush1.msk.msra.mxu0 %vm364_vm6, %v676_v35  ;;  %2085 = vmatpush1.msk.msra.mxu1 %vm364_vm6, %v2514_v3  ;;  %v1318_v35 = vld [vmem:[%s3254_s4] sm:$0xff] }
  0xa2   : > { %2082 = vmatmul.mubr.msk.f32.gmra.mrb[2].mxu1 %vm354_vm8, %v2077_v37  ;;  %2095 = vmatmul.mubr.msk.f32.gmra.mrb[2].mxu0 %vm354_vm8, %v2090_v38 }
  0xa3   : > { %447 = vmatprep.mubr.f32.mxu1 %v2402_v1  ;;  %656 = vmatprep.mubr.f32.mxu0 %v2402_v1 }
  0xa6   : > { %2083 = vmatmul.mubr.msk.f32.gmra.mrb[4].mxu1 %vm354_vm8, %v2078_v39  ;;  %2096 = vmatmul.mubr.msk.f32.gmra.mrb[4].mxu0 %vm354_vm8, %v2091_v40 }
  0xa7   : > { %533 = vmatprep.mubr.f32.mxu1 %v2402_v1  ;;  %761 = vmatprep.mubr.f32.mxu0 %v2402_v1 }
  0xaa   : > { %2086 = vmatmul.mubr.msk.f32.vlgmr.msra.gmra.mrb[0].mxu1 %vm354_vm8, %v338_v41  ;;  %2102 = vmatmul.mubr.msk.f32.vlgmr.msra.gmra.mrb[0].mxu0 %vm354_vm8, %v2097_v42 }
  0xab   : > { %539 = vmatprep.mubr.f32.mxu1 %v2402_v1  ;;  %767 = vmatprep.mubr.f32.mxu0 %v2402_v1 }
  0xad   : > { %v797_v47 = vpop.permute.xlu1 %796  ;;  %v792_v48 = vpop.permute.xlu0 %791 }
  0xae   : > { %2087 = vmatmul.mubr.msk.f32.gmra.mrb[2].mxu1 %vm354_vm8, %v339_v43  ;;  %2103 = vmatmul.mubr.msk.f32.gmra.mrb[2].mxu0 %vm354_vm8, %v2098_v44 }
  0xaf   : > { %545 = vmatprep.mubr.f32.mxu1 %v2402_v1  ;;  %773 = vmatprep.mubr.f32.mxu0 %v2402_v1 }
  0xb1   : > { %v802_v4 = vpop.permute.xlu1 %801 }
  0xb2   : > { %2088 = vmatmul.mubr.msk.f32.gmra.mrb[4].mxu1 %vm354_vm8, %v340_v45  ;;  %2104 = vmatmul.mubr.msk.f32.gmra.mrb[4].mxu0 %vm354_vm8, %v2099_v46 }
  0xb3   : > { %955 = vmatprep.mubr.f32.mxu1 %v2402_v1  ;;  %1501 = vmatprep.mubr.f32.mxu0 %v2402_v1 }
 0x17d   : > { %v535_v49 = vpop.f32.mrb[0].mxu1  ;;  %v763_v50 = vpop.f32.mrb[0].mxu0 }
 0x17e   : > { %v2234_v51 = vadd.f32 %v763_v50, %v535_v49  ;;  %v537_v52 = vpop.f32.mrb[1].mxu1  ;;  %v765_v53 = vpop.f32.mrb[1].mxu0 }
 0x17f   : > { %v2235_v54 = vadd.f32 %v765_v53, %v537_v52 }
 0x180   : > { %v804_v55 = vadd.f32 %v2234_v51, %v792_v48 }
 0x181   : > { %v805_v56 = vadd.f32 %v2235_v54, %v792_v48  ;;  %v541_v57 = vpop.f32.mrb[2].mxu1  ;;  %v769_v58 = vpop.f32.mrb[2].mxu0 }
 0x182   : > { %v810_v59 = vmax.f32 %v804_v55, 0.0  ;;  %v2236_v60 = vadd.f32 %v769_v58, %v541_v57  ;;  %v543_v61 = vpop.f32.mrb[3].mxu1  ;;  %v771_v62 = vpop.f32.mrb[3].mxu0 }
 0x183   : > { %v811_v63 = vmax.f32 %v805_v56, 0.0  ;;  %v2237_v0 = vadd.f32 %v771_v62, %v543_v61 }
 0x184   : > { %v822_v2 = vrot.slane %v810_v59, 4  ;;  %v806_v3 = vadd.f32 %v2236_v60, %v797_v47  ;;  %v2105_v59 = vld [vmem:[%s3253_s3 + $0x18] sm:$0xff] }
 0x185   : > { %v823_v5 = vrot.slane %v811_v63, 4  ;;  %v807_v6 = vadd.f32 %v2237_v0, %v797_v47  ;;  %v547_v7 = vpop.f32.mrb[4].mxu1  ;;  %v775_v8 = vpop.f32.mrb[4].mxu0 }
 0x186   : > { %838 = vst [vmem:[%s2509_s20] sm:$0xf0] %v822_v2  ;;  %v812_v9 = vmax.f32 %v806_v3, 0.0  ;;  %v2238_v11 = vadd.f32 %v775_v8, %v547_v7  ;;  %v549_v12 = vpop.f32.mrb[5].mxu1  ;;  %v777_v13 = vpop.f32.mrb[5].mxu0  ;;  %v2106_v3 = vld [vmem:[%s3253_s3 + $0x20] sm:$0xff] }
 0x187   : > { %839 = vst [vmem:[%s2509_s20 + $0x8] sm:$0xf0] %v823_v5  ;;  %v813_v14 = vmax.f32 %v807_v6, 0.0  ;;  %v2239_v15 = vadd.f32 %v777_v13, %v549_v12 }
 0x188   : > { %v824_v19 = vrot.slane %v812_v9, 4  ;;  %v808_v20 = vadd.f32 %v2238_v11, %v802_v4  ;;  %v2107_v9 = vld [vmem:[%s3253_s3 + $0x28] sm:$0xf] }
 0x189   : > { %v826_v21 = vrot.slane %v813_v14, 4  ;;  %v809_v22 = vadd.f32 %v2239_v15, %v802_v4 }
 0x18a   : > { %v2649_v23 = vsel %vm364_vm6, %v822_v2, %v824_v19  ;;  %v814_v24 = vmax.f32 %v808_v20, 0.0 }
 0x18b   : > { %840 = vst [vmem:[%s2509_s20 + $0x10] sm:$0xff] %v2649_v23  ;;  %v2654_v25 = vsel %vm364_vm6, %v823_v5, %v826_v21  ;;  %v815_v26 = vmax.f32 %v809_v22, 0.0  ;;  %855 = vrot.lane.b32.xlu1 %v2649_v23, %s2404_s22 }
 0x18c   : > { %841 = vst [vmem:[%s2509_s20 + $0x18] sm:$0xff] %v2654_v25  ;;  %v828_v27 = vrot.slane %v814_v24, 4 }
 0x18d   : > { %v830_v28 = vrot.slane %v815_v26, 4  ;;  %v2661_v30 = vld [vmem:[%s2509_s20] sm:$0xff] }
 0x18e   : > { %v2664_v31 = vsel %vm364_vm6, %v824_v19, %v828_v27  ;;  %853 = vrot.lane.b32.xlu0 %v2661_v30, %s2404_s22  ;;  %v2678_v33 = vld [vmem:[%s2509_s20 + $0x8] sm:$0xff]  ;;  %v2770_v63 = vpack.c.bf16 %v2649_v23, %v2661_v30  ;;  %v850_v19 = vld [vmem:[%s3253_s3] sm:$0xff] }
 0x18f   : > { %842 = vst [vmem:[%s2509_s20 + $0x20] sm:$0xff] %v2664_v31  ;;  %v2671_v32 = vsel %vm364_vm6, %v826_v21, %v830_v28  ;;  %861 = vrot.lane.b32.xlu1 %v2654_v25, %s2404_s22  ;;  %v2764_v61 = vpack.c.bf16 %v2654_v25, %v2678_v33  ;;  %v851_v28 = vld [vmem:[%s3253_s3 + $0x8] sm:$0xff] }
 0x190   : > { %843 = vst [vmem:[%s2509_s20 + $0x28] sm:$0xff] %v2671_v32 }
 0x192   : > { %859 = vrot.lane.b32.xlu0 %v2678_v33, %s2404_s22 }
 0x193   : > { %863 = vrot.lane.b32.xlu1 %v2671_v32, %s2404_s22 }
 0x196   : > { %857 = vrot.lane.b32.xlu0 %v2664_v31, %s2404_s22 }
 0x197   : > { %1068 = vrot.lane.b32.xlu1 %v2649_v23, %s2403_s21 }
 0x19a   : > { %1066 = vrot.lane.b32.xlu0 %v2661_v30, %s2403_s21 }
 0x19b   : > { %1074 = vrot.lane.b32.xlu1 %v2654_v25, %s2403_s21 }
 0x19e   : > { %1072 = vrot.lane.b32.xlu0 %v2678_v33, %s2403_s21 }
 0x19f   : > { %1076 = vrot.lane.b32.xlu1 %v2671_v32, %s2403_s21 }
 0x1a2   : > { %1070 = vrot.lane.b32.xlu0 %v2664_v31, %s2403_s21 }
 0x1a3   : > { %1194 = vrot.lane.b32.xlu1 %v2649_v23, %s2405_s23 }
 0x1a6   : > { %1192 = vrot.lane.b32.xlu0 %v2661_v30, %s2405_s23 }
 0x1a7   : > { %1200 = vrot.lane.b32.xlu1 %v2654_v25, %s2405_s23 }
 0x1aa   : > { %1198 = vrot.lane.b32.xlu0 %v2678_v33, %s2405_s23 }
 0x1ab   : > { %1202 = vrot.lane.b32.xlu1 %v2671_v32, %s2405_s23 }
 0x1ae   : > { %1196 = vrot.lane.b32.xlu0 %v2664_v31, %s2405_s23 }
 0x1af   : > { %1328 = vperm.xlu1 %2336, %v1319_v34  }
 0x1b2   : > { %1323 = vperm.xlu0 %2335, %v1318_v35  }
 0x1b3   : > { %1369 = vrot.lane.b32.xlu1 %v2661_v30, %s2404_s22 }
 0x1b6   : > { %1333 = vperm.xlu0 %2335, %v1320_v36  }
 0x1b7   : > { %1381 = vrot.lane.b32.xlu1 %v2678_v33, %s2404_s22 }
 0x1ba   : > { %1371 = vrot.lane.b32.xlu0 %v2649_v23, %s2404_s22 }
 0x1bb   : > { %1373 = vrot.lane.b32.xlu1 %v2664_v31, %s2404_s22 }
 0x1be   : > { %1383 = vrot.lane.b32.xlu0 %v2654_v25, %s2404_s22 }
 0x1bf   : > { %1618 = vrot.lane.b32.xlu1 %v2661_v30, %s2403_s21 }
 0x1c2   : > { %1620 = vrot.lane.b32.xlu0 %v2649_v23, %s2403_s21 }
 0x1c3   : > { %1630 = vrot.lane.b32.xlu1 %v2678_v33, %s2403_s21 }
 0x1c6   : > { %1632 = vrot.lane.b32.xlu0 %v2654_v25, %s2403_s21 }
 0x1c7   : > { %1622 = vrot.lane.b32.xlu1 %v2664_v31, %s2403_s21 }
 0x1cb   : > { %1385 = vrot.lane.b32.xlu1 %v2671_v32, %s2404_s22 }
 0x1fd   : > { %v856_v37 = vpop.permute.xlu1 %855 }
 0x200   : > { %v854_v38 = vpop.permute.xlu0 %853 }
 0x201   : > { %v862_v39 = vpop.permute.xlu1 %861 }
 0x202   : > { %v866_v40 = vsel %vm345_vm4, %v856_v37, %v862_v39  ;;  %v869_v41 = vsel %vm345_vm4, %v862_v39, %v856_v37  ;;  %v852_v39 = vld [vmem:[%s3253_s3 + $0x10] sm:$0xf] }
 0x203   : > { %v873_v48 = vmul.f32 %v2547_v16, %v866_v40  ;;  %v874_v49 = vmul.f32 %v2550_v17, %v869_v41 }
 0x204   : > { %v860_v42 = vpop.permute.xlu0 %859 }
 0x205   : > { %v865_v43 = vsel %vm345_vm4, %v854_v38, %v860_v42  ;;  %v868_v44 = vsel %vm345_vm4, %v860_v42, %v854_v38  ;;  %v864_v45 = vpop.permute.xlu1 %863 }
 0x206   : > { %v871_v46 = vmul.f32 %v2547_v16, %v865_v43  ;;  %v872_v47 = vmul.f32 %v2550_v17, %v868_v44 }
 0x208   : > { %v858_v50 = vpop.permute.xlu0 %857  ;;  %v2164_v51 = vpack.c.bf16 %v873_v48, %v871_v46  ;;  %v2162_v52 = vpack.c.bf16 %v874_v49, %v872_v47  ;;  %v2114_v46 = vld [vmem:[%s3253_s3 + $0x30] sm:$0xff] }
 0x209   : > { %v870_v53 = vsel %vm345_vm4, %v864_v45, %v858_v50  ;;  %v1069_v54 = vpop.permute.xlu1 %1068  ;;  %v867_v55 = vsel %vm345_vm4, %v858_v50, %v864_v45  ;;  %v2115_v50 = vld [vmem:[%s3253_s3 + $0x38] sm:$0xff] }
 0x20a   : > { %v876_v56 = vmul.f32 %v2550_v17, %v870_v53  ;;  %2163 = vmatprep.subr.bf16.mxu1 %v2162_v52  ;;  %v875_v58 = vmul.f32 %v2547_v16, %v867_v55  ;;  %v2116_v52 = vld [vmem:[%s3253_s3 + $0x40] sm:$0xf]  ;;  %v2120_v55 = vld [vmem:[%s3253_s3 + $0x48] sm:$0xff] }
 0x20b   : > { %2165 = vmatpush1.bf16.msra.mxu1 %v2164_v51 }
 0x20c   : > { %v1067_v57 = vpop.permute.xlu0 %1066  ;;  %895 = vmatprep.subr.mxu1 %v876_v56 }
 0x20d   : > { %v1075_v60 = vpop.permute.xlu1 %1074 }
 0x20e   : > { %v1082_v62 = vsel %vm556_vm3, %v1075_v60, %v1069_v54  ;;  %v1079_v20 = vsel %vm556_vm3, %v1069_v54, %v1075_v60 }
 0x20f   : > { %896 = vmatpush1.msra.mxu1 %v875_v58  ;;  %v1087_v6 = vmul.f32 %v2553_v18, %v1082_v62  ;;  %v2121_v58 = vld [vmem:[%s3253_s3 + $0x50] sm:$0xff]  ;;  %v2122_v62 = vld [vmem:[%s3253_s3 + $0x58] sm:$0xf] }
 0x210   : > { %v1073_v0 = vpop.permute.xlu0 %1072  ;;  %2108 = vmatmul.mubr.msk.f32.vlgmr.msra.gmra.mrb[6].mxu1 %vm881_vm9, %v2105_v59  ;;  %2167 = vmatprep.subr.bf16.mxu1 %v2764_v61 }
 0x211   : > { %v1081_v2 = vsel %vm556_vm3, %v1073_v0, %v1067_v57  ;;  %2169 = vmatpush1.bf16.msra.mxu1 %v2770_v63  ;;  %961 = vmatprep.mubr.f32.mxu1 %v2402_v1  ;;  %v1077_v4 = vpop.permute.xlu1 %1076  ;;  %v1078_v12 = vsel %vm556_vm3, %v1067_v57, %v1073_v0 }
 0x212   : > { %v1085_v5 = vmul.f32 %v2553_v18, %v1081_v2  ;;  %987 = vmatprep.subr.mxu1 %v2671_v32  ;;  %v2172_v21 = vpack.c.bf16 %v1079_v20, %v1078_v12 }
 0x214   : > { %v1071_v7 = vpop.permute.xlu0 %1070  ;;  %2109 = vmatmul.mubr.msk.f32.gmra.mrb[8].mxu1 %vm881_vm9, %v2106_v3  ;;  %v2170_v8 = vpack.c.bf16 %v1087_v6, %v1085_v5 }
 0x215   : > { %988 = vmatpush1.msra.mxu1 %v2664_v31  ;;  %967 = vmatprep.mubr.f32.mxu1 %v2402_v1  ;;  %v1195_v11 = vpop.permute.xlu1 %1194  ;;  %v1083_v14 = vsel %vm556_vm3, %v1077_v4, %v1071_v7  ;;  %v1080_v36 = vsel %vm556_vm3, %v1071_v7, %v1077_v4 }
 0x216   : > { %2171 = vmatprep.subr.bf16.mxu1 %v2170_v8  ;;  %v1089_v24 = vmul.f32 %v2553_v18, %v1083_v14 }
 0x218   : > { %v1193_v13 = vpop.permute.xlu0 %1192  ;;  %2110 = vmatmul.mubr.msk.f32.gmra.mrb[10].mxu1 %vm881_vm9, %v2107_v9 }
 0x219   : > { %1047 = vmatprep.mubr.f32.mxu1 %v2402_v1  ;;  %v1201_v15 = vpop.permute.xlu1 %1200 }
 0x21a   : > { %v1208_v22 = vsel %vm673_vm7, %v1201_v15, %v1195_v11  ;;  %v1205_v41 = vsel %vm673_vm7, %v1195_v11, %v1201_v15 }
 0x21b   : > { %v1213_v35 = vmul.f32 %v2572_v29, %v1208_v22  ;;  %v1212_v44 = vmul.f32 %v2547_v16, %v1205_v41 }
 0x21c   : > { %v1199_v26 = vpop.permute.xlu0 %1198  ;;  %2111 = vmatmul.mubr.msk.f32.vlgmr.msra.gmra.mrb[6].mxu1 %vm881_vm9, %v850_v19 }
 0x21d   : > { %v1207_v27 = vsel %vm673_vm7, %v1199_v26, %v1193_v13  ;;  %2173 = vmatpush1.bf16.msra.mxu1 %v2172_v21  ;;  %1053 = vmatprep.mubr.f32.mxu1 %v2402_v1  ;;  %v1204_v37 = vsel %vm673_vm7, %v1193_v13, %v1199_v26  ;;  %v1203_v43 = vpop.permute.xlu1 %1202 }
 0x21e   : > { %v1211_v34 = vmul.f32 %v2572_v29, %v1207_v27  ;;  %1107 = vmatprep.subr.mxu1 %v1089_v24  ;;  %v1210_v42 = vmul.f32 %v2547_v16, %v1204_v37 }
 0x220   : > { %2112 = vmatmul.mubr.msk.f32.gmra.mrb[8].mxu1 %vm881_vm9, %v851_v28  ;;  %v2174_v38 = vpack.c.bf16 %v1213_v35, %v1211_v34  ;;  %v1197_v40 = vpop.permute.xlu0 %1196  ;;  %v2176_v47 = vpack.c.bf16 %v1212_v44, %v1210_v42 }
 0x221   : > { %1108 = vmatpush1.msra.mxu1 %v1080_v36  ;;  %1059 = vmatprep.mubr.f32.mxu1 %v2402_v1  ;;  %v1209_v45 = vsel %vm673_vm7, %v1203_v43, %v1197_v40  ;;  %v1206_v48 = vsel %vm673_vm7, %v1197_v40, %v1203_v43 }
 0x222   : > { %2175 = vmatprep.subr.bf16.mxu1 %v2174_v38  ;;  %v1215_v49 = vmul.f32 %v2572_v29, %v1209_v45  ;;  %v1214_v51 = vmul.f32 %v2547_v16, %v1206_v48 }
 0x224   : > { %2113 = vmatmul.mubr.msk.f32.gmra.mrb[10].mxu1 %vm881_vm9, %v852_v39 }
 0x225   : > { %1167 = vmatprep.mubr.f32.mxu1 %v2402_v1 }
 0x228   : > { %2117 = vmatmul.mubr.msk.f32.vlgmr.msra.gmra.mrb[6].mxu1 %vm881_vm9, %v2114_v46 }
 0x229   : > { %2177 = vmatpush1.bf16.msra.mxu1 %v2176_v47  ;;  %1173 = vmatprep.mubr.f32.mxu1 %v2402_v1 }
 0x22a   : > { %1233 = vmatprep.subr.mxu1 %v1215_v49 }
 0x22c   : > { %2118 = vmatmul.mubr.msk.f32.gmra.mrb[8].mxu1 %vm881_vm9, %v2115_v50 }
 0x22d   : > { %1234 = vmatpush1.msra.mxu1 %v1214_v51  ;;  %1179 = vmatprep.mubr.f32.mxu1 %v2402_v1 }
 0x22e   : > { %v1329_v53 = vpop.permute.xlu1 %1328 }
 0x230   : > { %2119 = vmatmul.mubr.msk.f32.gmra.mrb[10].mxu1 %vm881_vm9, %v2116_v52 }
 0x231   : > { %v1324_v54 = vpop.permute.xlu0 %1323  ;;  %1293 = vmatprep.mubr.f32.mxu1 %v2402_v1 }
 0x232   : > { %v1370_v56 = vpop.permute.xlu1 %1369 }
 0x234   : > { %2123 = vmatmul.mubr.msk.f32.vlgmr.msra.gmra.mrb[6].mxu1 %vm881_vm9, %v2120_v55 }
 0x235   : > { %v1334_v57 = vpop.permute.xlu0 %1333  ;;  %1299 = vmatprep.mubr.f32.mxu1 %v2402_v1 }
 0x236   : > { %v1382_v60 = vpop.permute.xlu1 %1381 }
 0x237   : > { %v1393_v0 = vsel %vm345_vm4, %v1370_v56, %v1382_v60  ;;  %v1399_v2 = vsel %vm345_vm4, %v1382_v60, %v1370_v56 }
 0x238   : > { %2124 = vmatmul.mubr.msk.f32.gmra.mrb[8].mxu1 %vm881_vm9, %v2121_v58  ;;  %v1405_v8 = vmul.f32 %v2547_v16, %v1393_v0  ;;  %v1406_v9 = vmul.f32 %v2550_v17, %v1399_v2 }
 0x239   : > { %v1372_v59 = vpop.permute.xlu0 %1371  ;;  %1305 = vmatprep.mubr.f32.mxu1 %v2402_v1 }
 0x23c   : > { %2125 = vmatmul.mubr.msk.f32.gmra.mrb[10].mxu1 %vm881_vm9, %v2122_v62 }
 0x23d   : > { %v1384_v3 = vpop.permute.xlu0 %1383 }
 0x23e   : > { %v1394_v4 = vsel %vm345_vm4, %v1372_v59, %v1384_v3  ;;  %v1400_v5 = vsel %vm345_vm4, %v1384_v3, %v1372_v59 }
 0x23f   : > { %v1407_v6 = vmul.f32 %v2547_v16, %v1394_v4  ;;  %v1408_v7 = vmul.f32 %v2550_v17, %v1400_v5 }
 0x241   : > { %v2180_v11 = vpack.c.bf16 %v1407_v6, %v1405_v8  ;;  %v2178_v12 = vpack.c.bf16 %v1408_v7, %v1406_v9  ;;  %v2966_v47 = vpop.permute.xlu0 %1620 }
 0x243   : > { %2179 = vmatprep.subr.bf16.mxu0 %v2178_v12 }
 0x244   : > { %2181 = vmatpush1.bf16.msra.mxu0 %v2180_v11 }
 0x245   : > { %v2970_v49 = vpop.permute.xlu0 %1632 }
 0x307   : > { %v1295_v13 = vpop.f32.mrb[6].mxu1 }
 0x308   : > { %v1336_v14 = vadd.f32 %v1324_v54, %v1295_v13  ;;  %v1297_v15 = vpop.f32.mrb[7].mxu1 }
 0x309   : > { %v1337_v19 = vadd.f32 %v1324_v54, %v1297_v15 }
 0x30a   : > { %v2875_v20 = vmax.f32 %v1336_v14, 0.0 }
 0x30b   : > { %v2877_v21 = vmax.f32 %v1337_v19, 0.0  ;;  %v1301_v22 = vpop.f32.mrb[8].mxu1 }
 0x30c   : > { %1348 = vst [vmem:[%s2509_s20 + $0x30] sm:$0xff] %v2875_v20  ;;  %v1338_v24 = vadd.f32 %v1329_v53, %v1301_v22  ;;  %v1303_v26 = vpop.f32.mrb[9].mxu1  ;;  %1375 = vrot.lane.b32.xlu0 %v2875_v20, %s2404_s22 }
 0x30d   : > { %1349 = vst [vmem:[%s2509_s20 + $0x38] sm:$0xff] %v2877_v21  ;;  %v1339_v27 = vadd.f32 %v1329_v53, %v1303_v26  ;;  %v2149_v26 = vld [vmem:[%s3255_s5 + $0x58] sm:$0xf] }
 0x30e   : > { %v2885_v28 = vmax.f32 %v1338_v24, 0.0 }
 0x30f   : > { %v2887_v34 = vmax.f32 %v1339_v27, 0.0  ;;  %v1307_v35 = vpop.f32.mrb[10].mxu1 }
 0x310   : > { %1350 = vst [vmem:[%s2509_s20 + $0x40] sm:$0xff] %v2885_v28  ;;  %v1340_v36 = vadd.f32 %v1334_v57, %v1307_v35  ;;  %v1309_v37 = vpop.f32.mrb[11].mxu1  ;;  %1624 = vrot.lane.b32.xlu0 %v2875_v20, %s2403_s21  ;;  %1377 = vrot.lane.b32.xlu1 %v2885_v28, %s2404_s22 }
 0x311   : > { %1351 = vst [vmem:[%s2509_s20 + $0x48] sm:$0xff] %v2887_v34  ;;  %v1341_v38 = vadd.f32 %v1334_v57, %v1309_v37 }
 0x312   : > { %v1346_v39 = vmax.f32 %v1340_v36, 0.0 }
 0x313   : > { %v1347_v40 = vmax.f32 %v1341_v38, 0.0 }
 0x314   : > { %1352 = vst [vmem:[%s2509_s20 + $0x50] sm:$0xf] %v1346_v39  ;;  %1387 = vrot.lane.b32.xlu0 %v2877_v21, %s2404_s22  ;;  %1389 = vrot.lane.b32.xlu1 %v2887_v34, %s2404_s22 }
 0x315   : > { %1353 = vst [vmem:[%s2509_s20 + $0x58] sm:$0xf] %v1347_v40  ;;  %v2196_v40 = vpack.c.bf16 %v2877_v21, %v2671_v32 }
 0x318   : > { %1634 = vrot.lane.b32.xlu1 %v2671_v32, %s2403_s21 }
 0x31b   : > { %v2906_v41 = vld [vmem:[%s2509_s20 + $0x50] sm:$0xf] }
 0x31c   : > { %1379 = vrot.lane.b32.xlu0 %v2906_v41, %s2404_s22  ;;  %v2203_v42 = vpack.c.bf16 %v2906_v41, %v2885_v28  ;;  %1626 = vrot.lane.b32.xlu1 %v2885_v28, %s2403_s21  ;;  %v2915_v43 = vld [vmem:[%s2509_s20 + $0x58] sm:$0xf] }
 0x31d   : > { %v2200_v44 = vpack.c.bf16 %v2915_v43, %v2887_v34 }
 0x320   : > { %1391 = vrot.lane.b32.xlu0 %v2915_v43, %s2404_s22  ;;  %1638 = vrot.lane.b32.xlu1 %v2887_v34, %s2403_s21  ;;  %s2408_s22 = smov [#allocation2]  }
 0x321   : > { %s2342_s17 = sshll.u32 %s2408_s22, 4  ;;  %s2343_s17 = int_to_ptr.vmem [resolvable:$false] %s2342_s17 }
 0x322   : > { %s2344_s18 = scalar_lea.vmem %s2343_s17, 4096  ;;  %p2345_p0 = scmp.lt.s32.totalorder %s3201_s8, %s2343_s17 }
 0x323   : > { %p2346_p1 = scmp.lt.s32.totalorder %s2344_s18, %s2338_s16 }
 0x324   : > { %1636 = vrot.lane.b32.xlu0 %v2877_v21, %s2403_s21  ;;  %1774 = vrot.lane.b32.xlu1 %v2661_v30, %s2405_s23  ;;  %v1931_v30 = vld [vmem:[%s3256_s6 + $0x8] sm:$0xff] }
 0x325   : > { %p2347_p2 = por %p2346_p1, %p2345_p0 }
 0x327   : > { %p2348_p3 = pnand %p2347_p2, %p2341_p13 }
 0x328   : > { %1628 = vrot.lane.b32.xlu0 %v2906_v41, %s2403_s21  ;;  %1786 = vrot.lane.b32.xlu1 %v2678_v33, %s2405_s23  ;;  %v1374_v33 = vpop.permute.xlu1 %1373 }
 0x32c   : > { %1776 = vrot.lane.b32.xlu0 %v2649_v23, %s2405_s23  ;;  %1778 = vrot.lane.b32.xlu1 %v2664_v31, %s2405_s23  ;;  %v1930_v23 = vld [vmem:[%s3256_s6] sm:$0xff]  ;;  %v2962_v45 = vpop.permute.xlu1 %1618 }
 0x330   : > { %1788 = vrot.lane.b32.xlu0 %v2654_v25, %s2405_s23  ;;  %1790 = vrot.lane.b32.xlu1 %v2671_v32, %s2405_s23  ;;  %v1932_v25 = vld [vmem:[%s3256_s6 + $0x10] sm:$0xf]  ;;  %v2964_v46 = vpop.permute.xlu1 %1630 }
 0x331   : > { %v1648_v32 = vsel %vm556_vm3, %v2964_v46, %v2962_v45 }
 0x334   : > { %1780 = vrot.lane.b32.xlu0 %v2875_v20, %s2405_s23  ;;  %1782 = vrot.lane.b32.xlu1 %v2885_v28, %s2405_s23  ;;  %v2968_v48 = vpop.permute.xlu1 %1622 }
 0x338   : > { %1640 = vrot.lane.b32.xlu0 %v2915_v43, %s2403_s21  ;;  %1794 = vrot.lane.b32.xlu1 %v2887_v34, %s2405_s23  ;;  %v1386_v50 = vpop.permute.xlu1 %1385  ;;  %v1366_v34 = vld [vmem:[%s3255_s5] sm:$0xff] }
 0x339   : > { %v1395_v54 = vsel %vm345_vm4, %v1374_v33, %v1386_v50  ;;  %v1401_v55 = vsel %vm345_vm4, %v1386_v50, %v1374_v33  ;;  %v2128_v50 = vld [vmem:[%s3255_s5 + $0x28] sm:$0xf] }
 0x33a   : > { %v1409_v60 = vmul.f32 %v2547_v16, %v1395_v54  ;;  %v1410_v62 = vmul.f32 %v2550_v17, %v1401_v55 }
 0x33c   : > { %1792 = vrot.lane.b32.xlu0 %v2877_v21, %s2405_s23  ;;  %1935 = vperm.xlu1 %2336, %v1930_v23   ;;  %v1649_v23 = vsel %vm556_vm3, %v2970_v49, %v2966_v47  ;;  %v2198_v21 = vpack.c.bf16 %v2875_v20, %v2664_v31 }
 0x340   : > { %1784 = vrot.lane.b32.xlu0 %v2906_v41, %s2405_s23  ;;  %1945 = vperm.xlu1 %2336, %v1932_v25  }
 0x344   : > { %1796 = vrot.lane.b32.xlu0 %v2915_v43, %s2405_s23  ;;  %v1642_v43 = vsel %vm556_vm3, %v2962_v45, %v2964_v46  ;;  %v1367_v46 = vld [vmem:[%s3255_s5 + $0x8] sm:$0xff]  ;;  %s2161_s23 = sshll.u32 %s2472_s28, 11  ;;  %s3209_s28 = scalar_lea.sflag [#allocation3], %s269_s13 }
 0x345   : > { %s3199_s15 = scalar_lea.hbm %s3257_s7, %s2161_s23 }
 0x348   : > { %1940 = vperm.xlu0 %2335, %v1931_v30   ;;  %v1657_v30 = vmul.f32 %v2553_v18, %v1649_v23 }
 0x37e   : > { %v1376_v51 = vpop.permute.xlu0 %1375 }
 0x382   : > { %v2972_v52 = vpop.permute.xlu0 %1624  ;;  %v1378_v53 = vpop.permute.xlu1 %1377 }
 0x386   : > { %v1388_v56 = vpop.permute.xlu0 %1387  ;;  %v1390_v57 = vpop.permute.xlu1 %1389 }
 0x387   : > { %v1396_v58 = vsel %vm345_vm4, %v1376_v51, %v1388_v56  ;;  %v1402_v59 = vsel %vm345_vm4, %v1388_v56, %v1376_v51  ;;  %v1397_v8 = vsel %vm345_vm4, %v1378_v53, %v1390_v57  ;;  %v1403_v9 = vsel %vm345_vm4, %v1390_v57, %v1378_v53 }
 0x388   : > { %v1411_v0 = vmul.f32 %v2547_v16, %v1396_v58  ;;  %v1412_v2 = vmul.f32 %v2550_v17, %v1402_v59  ;;  %v1413_v15 = vmul.f32 %v2547_v16, %v1397_v8  ;;  %v1414_v19 = vmul.f32 %v2550_v17, %v1403_v9 }
 0x389   : > { %v1655_v51 = vmul.f32 %v2553_v18, %v1648_v32  ;;  %v1643_v53 = vsel %vm556_vm3, %v2966_v47, %v2970_v49  ;;  %v2140_v32 = vld [vmem:[%s3255_s5 + $0x38] sm:$0xff] }
 0x38a   : > { %v2184_v3 = vpack.c.bf16 %v1411_v0, %v1409_v60  ;;  %v2986_v4 = vpop.permute.xlu1 %1634  ;;  %v2182_v5 = vpack.c.bf16 %v1412_v2, %v1410_v62  ;;  %v2208_v28 = vpack.c.bf16 %v1643_v53, %v1642_v43  ;;  %v2141_v53 = vld [vmem:[%s3255_s5 + $0x40] sm:$0xf] }
 0x38b   : > { %v1650_v20 = vsel %vm556_vm3, %v2986_v4, %v2968_v48  ;;  %v2206_v55 = vpack.c.bf16 %v1657_v30, %v1655_v51  ;;  %v1644_v57 = vsel %vm556_vm3, %v2968_v48, %v2986_v4 }
 0x38c   : > { %2183 = vmatprep.subr.bf16.mxu0 %v2182_v5  ;;  %v1368_v5 = vld [vmem:[%s3255_s5 + $0x10] sm:$0xf] }
 0x38d   : > { %2185 = vmatpush1.bf16.msra.mxu0 %v2184_v3 }
 0x38e   : > { %v1380_v6 = vpop.permute.xlu0 %1379  ;;  %v2988_v7 = vpop.permute.xlu1 %1626 }
 0x392   : > { %v1392_v11 = vpop.permute.xlu0 %1391  ;;  %v2994_v12 = vpop.permute.xlu1 %1638 }
 0x393   : > { %v1398_v13 = vsel %vm345_vm4, %v1380_v6, %v1392_v11  ;;  %v1404_v14 = vsel %vm345_vm4, %v1392_v11, %v1380_v6  ;;  %v1652_v41 = vsel %vm556_vm3, %v2994_v12, %v2988_v7  ;;  %v1646_v6 = vsel %vm556_vm3, %v2988_v7, %v2994_v12 }
 0x394   : > { %v1415_v22 = vmul.f32 %v2547_v16, %v1398_v13  ;;  %v1416_v24 = vmul.f32 %v2550_v17, %v1404_v14  ;;  %v2126_v17 = vld [vmem:[%s3255_s5 + $0x18] sm:$0xff] }
 0x396   : > { %v2186_v27 = vpack.c.bf16 %v1416_v24, %v1414_v19  ;;  %v2189_v35 = vpack.c.bf16 %v1415_v22, %v1413_v15  ;;  %v1637_v36 = vpop.permute.xlu0 %1636  ;;  %v3009_v37 = vpop.permute.xlu1 %1774 }
 0x397   : > { %v1651_v33 = vsel %vm556_vm3, %v1637_v36, %v2972_v52 }
 0x398   : > { %2188 = vmatprep.subr.msk.bf16.mxu0 %vm3005_vm11, %v2186_v27  ;;  %v1661_v54 = vmul.f32 %v2553_v18, %v1651_v33  ;;  %v2139_v27 = vld [vmem:[%s3255_s5 + $0x30] sm:$0xff] }
 0x399   : > { %2191 = vmatpush1.bf16.msk.msra.mxu0 %vm3005_vm11, %v2189_v35 }
 0x39a   : > { %2193 = vmatprep.subr.bf16.mxu0 %v2764_v61  ;;  %v1629_v38 = vpop.permute.xlu0 %1628  ;;  %v1787_v39 = vpop.permute.xlu1 %1786  ;;  %v2127_v61 = vld [vmem:[%s3255_s5 + $0x20] sm:$0xff] }
 0x39b   : > { %v1804_v60 = vsel %vm673_vm7, %v1787_v39, %v3009_v37  ;;  %v1798_v8 = vsel %vm673_vm7, %v3009_v37, %v1787_v39 }
 0x39c   : > { %2131 = vmatmul.mubr.msk.f32.vlgmr.msra.gmra.mrb[6].mxu0 %vm1421_vm12, %v2126_v17  ;;  %v1810_v24 = vmul.f32 %v2547_v16, %v1798_v8 }
 0x39d   : > { %2195 = vmatpush1.bf16.msra.mxu0 %v2770_v63  ;;  %1507 = vmatprep.mubr.f32.mxu0 %v2402_v1 }
 0x39e   : > { %2197 = vmatprep.subr.bf16.mxu0 %v2196_v40  ;;  %v1777_v25 = vpop.permute.xlu0 %1776  ;;  %v3039_v63 = vpop.permute.xlu1 %1778 }
 0x3a0   : > { %2132 = vmatmul.mubr.msk.f32.gmra.mrb[8].mxu0 %vm1421_vm12, %v2127_v61 }
 0x3a1   : > { %2199 = vmatpush1.bf16.msra.mxu0 %v2198_v21  ;;  %1513 = vmatprep.mubr.f32.mxu0 %v2402_v1 }
 0x3a2   : > { %v1789_v31 = vpop.permute.xlu0 %1788  ;;  %2202 = vmatprep.subr.msk.bf16.mxu0 %vm3005_vm11, %v2200_v44  ;;  %v1659_v44 = vmul.f32 %v2553_v18, %v1650_v20  ;;  %v1791_v47 = vpop.permute.xlu1 %1790 }
 0x3a3   : > { %v1805_v45 = vsel %vm673_vm7, %v1789_v31, %v1777_v25  ;;  %v1799_v0 = vsel %vm673_vm7, %v1777_v25, %v1789_v31  ;;  %v1806_v14 = vsel %vm673_vm7, %v1791_v47, %v3039_v63  ;;  %v1800_v35 = vsel %vm673_vm7, %v3039_v63, %v1791_v47 }
 0x3a4   : > { %2133 = vmatmul.mubr.msk.f32.gmra.mrb[10].mxu0 %vm1421_vm12, %v2128_v50  ;;  %v2210_v56 = vpack.c.bf16 %v1661_v54, %v1659_v44  ;;  %v1813_v2 = vmul.f32 %v2572_v29, %v1805_v45  ;;  %v1812_v13 = vmul.f32 %v2547_v16, %v1799_v0  ;;  %v1814_v23 = vmul.f32 %v2547_v16, %v1800_v35 }
 0x3a5   : > { %2205 = vmatpush1.bf16.msk.msra.mxu0 %vm3005_vm11, %v2203_v42  ;;  %1599 = vmatprep.mubr.f32.mxu0 %v2402_v1  ;;  %v1645_v42 = vsel %vm556_vm3, %v2972_v52, %v1637_v36  ;;  %v1663_v52 = vmul.f32 %v2553_v18, %v1652_v41  ;;  %v1815_v36 = vmul.f32 %v2572_v29, %v1806_v14 }
 0x3a6   : > { %v1781_v49 = vpop.permute.xlu0 %1780  ;;  %2207 = vmatprep.subr.bf16.mxu0 %v2206_v55  ;;  %v2212_v59 = vpack.c.bf16 %v1645_v42, %v1644_v57  ;;  %v1783_v3 = vpop.permute.xlu1 %1782 }
 0x3a8   : > { %2136 = vmatmul.mubr.msk.f32.vlgmr.msra.gmra.mrb[6].mxu0 %vm1421_vm12, %v1366_v34 }
 0x3a9   : > { %2209 = vmatpush1.bf16.msra.mxu0 %v2208_v28  ;;  %1605 = vmatprep.mubr.f32.mxu0 %v2402_v1 }
 0x3aa   : > { %v1641_v58 = vpop.permute.xlu0 %1640  ;;  %2211 = vmatprep.subr.bf16.mxu0 %v2210_v56  ;;  %v1795_v37 = vpop.permute.xlu1 %1794 }
 0x3ab   : > { %v1653_v62 = vsel %vm556_vm3, %v1641_v58, %v1629_v38  ;;  %v1647_v48 = vsel %vm556_vm3, %v1629_v38, %v1641_v58  ;;  %v2222_v38 = vpack.c.bf16 %v1812_v13, %v1810_v24  ;;  %v1802_v61 = vsel %vm673_vm7, %v1783_v3, %v1795_v37 }
 0x3ac   : > { %v1665_v4 = vmul.f32 %v2553_v18, %v1653_v62  ;;  %2137 = vmatmul.mubr.msk.f32.gmra.mrb[8].mxu0 %vm1421_vm12, %v1367_v46  ;;  %v1811_v18 = vmul.f32 %v2572_v29, %v1804_v60  ;;  %v2217_v15 = vpack.c.bf16 %v1647_v48, %v1646_v6  ;;  %v1808_v25 = vsel %vm673_vm7, %v1795_v37, %v1783_v3 }
 0x3ad   : > { %2213 = vmatpush1.bf16.msra.mxu0 %v2212_v59  ;;  %1611 = vmatprep.mubr.f32.mxu0 %v2402_v1  ;;  %v1818_v50 = vmul.f32 %v2547_v16, %v1802_v61  ;;  %v1819_v51 = vmul.f32 %v2572_v29, %v1808_v25 }
 0x3ae   : > { %v2214_v9 = vpack.c.bf16 %v1665_v4, %v1663_v52  ;;  %v1793_v11 = vpop.permute.xlu0 %1792  ;;  %v2220_v22 = vpack.c.bf16 %v1813_v2, %v1811_v18 }
 0x3af   : > { %v1807_v19 = vsel %vm673_vm7, %v1793_v11, %v1781_v49  ;;  %v1801_v7 = vsel %vm673_vm7, %v1781_v49, %v1793_v11 }
 0x3b0   : > { %v1817_v12 = vmul.f32 %v2572_v29, %v1807_v19  ;;  %2138 = vmatmul.mubr.msk.f32.gmra.mrb[10].mxu0 %vm1421_vm12, %v1368_v5  ;;  %2216 = vmatprep.subr.msk.bf16.mxu0 %vm3005_vm11, %v2214_v9  ;;  %v1816_v39 = vmul.f32 %v2547_v16, %v1801_v7 }
 0x3b1   : > { %2219 = vmatpush1.bf16.msk.msra.mxu0 %vm3005_vm11, %v2217_v15  ;;  %1749 = vmatprep.mubr.f32.mxu0 %v2402_v1 }
 0x3b2   : > { %v1785_v17 = vpop.permute.xlu0 %1784  ;;  %2221 = vmatprep.subr.bf16.mxu0 %v2220_v22  ;;  %v2224_v40 = vpack.c.bf16 %v1817_v12, %v1815_v36  ;;  %v2226_v30 = vpack.c.bf16 %v1816_v39, %v1814_v23 }
 0x3b4   : > { %2144 = vmatmul.mubr.msk.f32.vlgmr.msra.gmra.mrb[6].mxu0 %vm1421_vm12, %v2139_v27 }
 0x3b5   : > { %2223 = vmatpush1.bf16.msra.mxu0 %v2222_v38  ;;  %1755 = vmatprep.mubr.f32.mxu0 %v2402_v1 }
 0x3b6   : > { %v1797_v21 = vpop.permute.xlu0 %1796  ;;  %2225 = vmatprep.subr.bf16.mxu0 %v2224_v40 }
 0x3b7   : > { %v1803_v63 = vsel %vm673_vm7, %v1785_v17, %v1797_v21  ;;  %v1809_v33 = vsel %vm673_vm7, %v1797_v21, %v1785_v17 }
 0x3b8   : > { %v1820_v31 = vmul.f32 %v2547_v16, %v1803_v63  ;;  %v1821_v20 = vmul.f32 %v2572_v29, %v1809_v33  ;;  %2145 = vmatmul.mubr.msk.f32.gmra.mrb[8].mxu0 %vm1421_vm12, %v2140_v32  ;;  %v2147_v16 = vld [vmem:[%s3255_s5 + $0x48] sm:$0xff]  ;;  %v2148_v29 = vld [vmem:[%s3255_s5 + $0x50] sm:$0xff] }
 0x3b9   : > { %2227 = vmatpush1.bf16.msra.mxu0 %v2226_v30  ;;  %1761 = vmatprep.mubr.f32.mxu0 %v2402_v1 }
 0x3ba   : > { %v2228_v54 = vpack.c.bf16 %v1821_v20, %v1819_v51  ;;  %v2231_v10 = vpack.c.bf16 %v1820_v31, %v1818_v50 }
 0x3bb   : > { %v1936_v55 = vpop.permute.xlu1 %1935 }
 0x3bc   : > { %2146 = vmatmul.mubr.msk.f32.gmra.mrb[10].mxu0 %vm1421_vm12, %v2141_v53  ;;  %2230 = vmatprep.subr.msk.bf16.mxu0 %vm3005_vm11, %v2228_v54 }
 0x3bd   : > { %2233 = vmatpush1.bf16.msk.msra.mxu0 %vm3005_vm11, %v2231_v10  ;;  %1905 = vmatprep.mubr.f32.mxu0 %v2402_v1 }
 0x3bf   : > { %v1946_v52 = vpop.permute.xlu1 %1945 }
 0x3c0   : > { %2152 = vmatmul.mubr.msk.f32.vlgmr.msra.gmra.mrb[6].mxu0 %vm1421_vm12, %v2147_v16 }
 0x3c1   : > { %1911 = vmatprep.mubr.f32.mxu0 %v2402_v1 }
 0x3c4   : > { %2153 = vmatmul.mubr.msk.f32.gmra.mrb[8].mxu0 %vm1421_vm12, %v2148_v29 }
 0x3c5   : > { %1917 = vmatprep.mubr.f32.mxu0 %v2402_v1 }
 0x3c7   : > { %v1941_v28 = vpop.permute.xlu0 %1940 }
 0x3c8   : > { %2154 = vmatmul.mubr.msk.f32.gmra.mrb[10].mxu0 %vm1421_vm12, %v2149_v26 }
 0x493   : > { %v1907_v34 = vpop.f32.mrb[6].mxu0 }
 0x494   : > { %v1948_v43 = vadd.f32 %v1936_v55, %v1907_v34  ;;  %v1909_v44 = vpop.f32.mrb[7].mxu0 }
 0x495   : > { %v1949_v47 = vadd.f32 %v1936_v55, %v1909_v44 }
 0x496   : > { %v1954_v49 = vmax.f32 %v1948_v43, 0.0 }
 0x497   : > { %v1955_v41 = vmax.f32 %v1949_v47, 0.0  ;;  %v1913_v42 = vpop.f32.mrb[8].mxu0 }
 0x498   : > { %v1966_v56 = vrot.slane %v1954_v49, 4  ;;  %v1950_v45 = vadd.f32 %v1941_v28, %v1913_v42  ;;  %v1915_v1 = vpop.f32.mrb[9].mxu0 }
 0x499   : > { %v1967_v46 = vrot.slane %v1955_v41, 4  ;;  %v1951_v57 = vadd.f32 %v1941_v28, %v1915_v1 }
 0x49a   : > { %1982 = vst [vmem:[%s2509_s20 + $0x50] sm:$0xf0] %v1966_v56  ;;  %v1956_v58 = vmax.f32 %v1950_v45, 0.0 }
 0x49b   : > { %1983 = vst [vmem:[%s2509_s20 + $0x58] sm:$0xf0] %v1967_v46  ;;  %v1957_v59 = vmax.f32 %v1951_v57, 0.0  ;;  %v1919_v60 = vpop.f32.mrb[10].mxu0 }
 0x49c   : > { %v1968_v62 = vrot.slane %v1956_v58, 4  ;;  %v1952_v0 = vadd.f32 %v1946_v52, %v1919_v60  ;;  %v1921_v2 = vpop.f32.mrb[11].mxu0 }
 0x49d   : > { %v1970_v3 = vrot.slane %v1957_v59, 4  ;;  %v1953_v48 = vadd.f32 %v1946_v52, %v1921_v2 }
 0x49e   : > { %v1969_v4 = vsel %vm364_vm6, %v1966_v56, %v1968_v62  ;;  %v1958_v5 = vmax.f32 %v1952_v0, 0.0 }
 0x49f   : > { %1984 = vst [vmem:[%s2509_s20 + $0x60] sm:$0xff] %v1969_v4  ;;  %v1971_v6 = vsel %vm364_vm6, %v1967_v46, %v1970_v3  ;;  %v1959_v8 = vmax.f32 %v1953_v48, 0.0 }
 0x4a0   : > { %1985 = vst [vmem:[%s2509_s20 + $0x68] sm:$0xff] %v1971_v6  ;;  %v1972_v18 = vrot.slane %v1958_v5, 4 }
 0x4a1   : > { %v1974_v9 = vrot.slane %v1959_v8, 4 }
 0x4a2   : > { %v1973_v11 = vsel %vm364_vm6, %v1968_v62, %v1972_v18 }
 0x4a3   : > { %1986 = vst [vmem:[%s2509_s20 + $0x70] sm:$0xff] %v1973_v11  ;;  %v1975_v13 = vsel %vm364_vm6, %v1970_v3, %v1974_v9 }
 0x4a4   : > { %1987 = vst [vmem:[%s2509_s20 + $0x78] sm:$0xff] %v1975_v13 }
 0x4a5   : > { %2351 = shalt.err (!%p2348_p3)
}
 0x4a6   : > { %s2352_s13 = scalar_lea.hbm %s3199_s15, 2048  ;;  %s2356_s21 = scalar_lea.hbm %s3257_s7, 4096 }
 0x4a7   : > { %p2353_p4 = scmp.ne.s32.totalorder %s3199_s15, %s2352_s13  ;;  %p2357_p9 = scmp.lt.u32.totalorder %s3199_s15, %s3257_s7 }
 0x4a8   : > { %p2358_p10 = scmp.lt.u32.totalorder %s2356_s21, %s2352_s13  ;;  %p2360_p12 = scmp.lt.u32.totalorder %s2352_s13, %s3199_s15 }
 0x4a9   : > { %p2354_p7 = pnand %p2353_p4, %p2489_p5 }
 0x4aa   : > { %p2359_p11 = por %p2358_p10, %p2357_p9 }
 0x4ab   : > { %p2355_p8 = pneg %p2354_p7 }
 0x4ac   : > { %p2361_p13 = por %p2360_p12, %p2359_p11 }
 0x4ae   : > { %p2362_p0 = pnand %p2361_p13, %p2355_p8 }
 0x4b0   : > { %2365 = shalt.err (!%p2362_p0)
}
 0x4b1   : > { %s2409_s9 = smov 256   ;;  %s2410_s14 = smov 16  }
 0x4b2   : > { %2288 = dma.vmem_to_hbm [thread:$0]  (%p2489_p5), %s3201_s8, 2048, %s3199_s15, %s3209_s28, %s2409_s9, %s2409_s9, %s2410_s14  }
 0x4b3 PF: > { %p2294_p1 = scmp.ge.s32.totalorder %s2400_s27, 2  ;;  %s2017_s16 = sand.u32 1, %s2388_s24  }
 0x4b4   : > { %s2018_s22 = scalar_lea.sflag [#allocation3], %s2017_s16 }
 0x4b5   : > { %p2291_p2 = pnand %p2294_p1, %p2493_p6 }
 0x4b7   : > { %2383 = dma.done.wait (!%p2291_p2), %s2018_s22, 2048  }
 0x4b8   : > { %2385 = vsyncadd (!%p2291_p2), %s2018_s22, 4294965248  ;;  %p17_p3 = scmp.ge.s32.totalorder %s2476_s30, 4   ;;  %s3262_s24 = smov %s2392_s25 }
 0x4b9   : > { %s3263_s25 = smov %s2396_s26  ;;  %s3264_s26 = smov %s2487_s10 }
 0x4ba   : > { %s3265_s27 = smov %s2476_s30  ;;  %19 = sbr.rel (!%p17_p3) target bundleno = 3 (0x3), region = 92 }
 0x4c1   :  { %2023 = vsyncpa [#allocation3], 1 }
 0x4c2   :  { %2025 = vsyncpa [#allocation3 + $0x1], 1 }

</bundles_post_ra>
